<compile_context>
chip_gen: v7x
topology: tpu7x:2x2x1
jax: 0.10.0
libtpu: 0.0.40
codegen_flags: <defaults>
</compile_context>

<pallas_src>
import jax
import jax.numpy as jnp
from jax.experimental import pallas as pl
from jax.experimental.pallas import tpu as pltpu


def _round_up(n, m):
    return ((n + m - 1) // m) * m


def _pick_block_b(B, S, H, E, Hout, ctx_itemsize, max_block_b=2048):
    """Pick the batch block Bt and a vmem_limit_bytes from the chip's actual VMEM."""
    try:
        vmem_cap = int(pltpu.get_tpu_info().vmem_capacity_bytes)
    except Exception:
        vmem_cap = 64 * 1024 * 1024  # v7x has the smallest VMEM -> safe fallback
    budget = int(vmem_cap * 0.65)    # headroom for compiler temporaries / spills

    # Grid-invariant weight / bias tiles (single-buffered).
    fixed = (H * H + H + 2 * H * Hout + E * Hout + Hout) * 4

    # Honest per-batch-row f32/bf16 VMEM footprint (see kernel body).
    per_row = (2 * S * H * ctx_itemsize       # ctx stream, 2 pipeline buffers
               + S * H * 4                    # f32 upcast of the ctx block
               + S * H * 4                    # broadcast-multiply product temporary
               + 2 * (H + E + Hout + S) * 4   # h / x / out / attn pipeline buffers
               + (2 * H + 4 * S) * 4)         # gamma, c_t, scores / p / w vectors
    bt_budget = max(8, (budget - fixed) // max(1, per_row))

    if B <= 8:
        bt = B                                # one block; dims equal the full array dims
    else:
        # Keep >=2 grid steps (>=4 when B allows) so DMA pipelines and both v7x TCs work.
        desired_steps = 4 if B >= 32 else 2
        bt_split = _round_up(pl.cdiv(B, desired_steps), 8)
        bt = min(bt_budget, bt_split, max_block_b, _round_up(B, 8))
        bt = max(8, (bt // 8) * 8)

    need = fixed + bt * per_row + (8 << 20)
    vmem_limit = int(min(vmem_cap * 0.9, max(32 << 20, need)))
    return bt, vmem_limit


def _luong_attention_kernel(h_ref, x_ref, ctx_ref, win_ref, bin_ref,
                            wc_ref, wh_ref, wx_ref, bout_ref,
                            out_ref, attn_ref):
    # Per-grid-step views (one batch block):
    #   h_ref: (Bt,H)  x_ref: (Bt,E)  ctx_ref: (Bt,S,H) bf16
    #   win_ref: (H,H)  bin_ref: (1,H)
    #   wc_ref/wh_ref: (H,Hout)  wx_ref: (E,Hout)  bout_ref: (1,Hout)
    #   out_ref: (Bt,Hout)  attn_ref: (Bt,S)
    h = h_ref[...]
    x = x_ref[...]
    ctx = ctx_ref[...].astype(jnp.float32)        # bf16 HBM stream -> f32 compute

    # gamma_h = linear_in(h): MXU matmul + bias.
    gamma = jnp.dot(h, win_ref[...], preferred_element_type=jnp.float32) + bin_ref[...]

    # scores = bmm(context, gamma_h): lane-dense (Bt, S); the degenerate matvec is a VPU
    # broadcast-multiply + lane reduction (no 1-column MXU matmul, no transposes).
    scores = jnp.sum(ctx * gamma[:, None, :], axis=-1)            # (Bt, S)

    # Softmax over the seq axis (== torch.nn.Softmax(dim=1) on (B,S)); exact divide so the
    # returned attention weights sum to 1 like the PyTorch reference.
    m = jnp.max(scores, axis=-1, keepdims=True)
    p = jnp.exp(scores - m)
    w = p / jnp.sum(p, axis=-1, keepdims=True)                    # (Bt, S)
    attn_ref[...] = w.astype(attn_ref.dtype)

    # c_t = bmm(weights, context): weighted sum over seq (VPU multiply + sublane reduce).
    c_t = jnp.sum(ctx * w[:, :, None], axis=1)                    # (Bt, H)

    # linear_out(cat([c_t, h, x])) with the weight pre-split -> three MXU matmuls
    # (the concat is never materialized); tanh on the EUP.
    pre = (jnp.dot(c_t, wc_ref[...], preferred_element_type=jnp.float32)
           + jnp.dot(h, wh_ref[...], preferred_element_type=jnp.float32)
           + jnp.dot(x, wx_ref[...], preferred_element_type=jnp.float32)
           + bout_ref[...])
    out_ref[...] = jnp.tanh(pre).astype(out_ref.dtype)


def luong_attention_forward(h, x, context, W_in, b_in, W_out, b_out,
                            *, context_dtype=jnp.bfloat16, max_block_b=2048):
    """Pallas equivalent of luong_attention.forward (pool_size=0 path).

    h:       (B, H)            -- decoder hidden state
    x:       (B, E)            -- input embedding
    context: (B, S, H)         -- self.context (already transposed by init_context)
    W_in:    (H, H), b_in: (H,)      -- linear_in
    W_out:   (H, 2H+E), b_out: (H,)  -- linear_out[0] (Linear), followed by Tanh
    Returns: (output (B, H), weights (B, S))
    """
    B, H = h.shape
    _, E = x.shape
    Bc, S, Hc = context.shape
    assert Bc == B and Hc == H
    Hout, In = W_out.shape
    assert In == 2 * H + E

    # Wrapper-side layout plumbing: pre-transpose / pre-split linear_out's weight so the
    # kernel never materializes cat([c_t, h, x]).
    W_in_t = jnp.asarray(W_in, jnp.float32).T          # (H, H)
    W_out_t = jnp.asarray(W_out, jnp.float32).T        # (2H+E, Hout)
    Wc, Wh, Wx = W_out_t[:H], W_out_t[H:2 * H], W_out_t[2 * H:]
    b_in2 = jnp.asarray(b_in, jnp.float32).reshape(1, H)
    b_out2 = jnp.asarray(b_out, jnp.float32).reshape(1, Hout)

    # Stream the dominant (B,S,H) tensor as bf16 (halves HBM traffic); compute stays f32.
    # In the real decoder this cast belongs in init_context (amortized over decode steps).
    ctx = context.astype(context_dtype)
    h = h.astype(jnp.float32)
    x = x.astype(jnp.float32)

    Bt, vmem_limit = _pick_block_b(B, S, H, E, Hout, ctx.dtype.itemsize, max_block_b)
    grid = (pl.cdiv(B, Bt),)   # ragged last block handled by Pallas -> no wrapper-side pad

    def call(single_buffer_weights):
        def const_spec(shape):
            kw = {"pipeline_mode": pl.Buffered(1)} if single_buffer_weights else {}
            return pl.BlockSpec(shape, lambda b, _n=len(shape): (0,) * _n, **kw)

        return pl.pallas_call(
            _luong_attention_kernel,
            out_shape=(
                jax.ShapeDtypeStruct((B, Hout), jnp.float32),
                jax.ShapeDtypeStruct((B, S), jnp.float32),
            ),
            grid_spec=pltpu.PrefetchScalarGridSpec(
                num_scalar_prefetch=0,
                grid=grid,
                in_specs=[
                    pl.BlockSpec((Bt, H), lambda b: (b, 0)),
                    pl.BlockSpec((Bt, E), lambda b: (b, 0)),
                    pl.BlockSpec((Bt, S, H), lambda b: (b, 0, 0)),
                    const_spec((H, H)),        # W_in^T
                    const_spec((1, H)),        # b_in
                    const_spec((H, Hout)),     # W_out^T slice for c_t
                    const_spec((H, Hout)),     # W_out^T slice for h
                    const_spec((E, Hout)),     # W_out^T slice for x
                    const_spec((1, Hout)),     # b_out
                ],
                out_specs=[
                    pl.BlockSpec((Bt, Hout), lambda b: (b, 0)),
                    pl.BlockSpec((Bt, S), lambda b: (b, 0)),
                ],
            ),
            compiler_params=pltpu.CompilerParams(
                dimension_semantics=("parallel",),   # batch blocks shard across v7x's 2 TCs
                vmem_limit_bytes=vmem_limit,
            ),
        )(h, x, ctx, W_in_t, b_in2, Wc, Wh, Wx, b_out2)

    try:
        out, weights = call(True)
    except Exception:
        # pipeline_mode=pl.Buffered(1) unsupported on this jax build -> default buffering.
        out, weights = call(False)
    return out, weights


def _reference(h, x, context, W_in, b_in, W_out, b_out):
    # Pure-JAX mirror of the PyTorch forward (pool_size=0).
    gamma = h @ W_in.T + b_in                                    # linear_in(h)
    weights = jnp.einsum("bsh,bh->bs", context, gamma)           # bmm(context, gamma_h)
    weights = jax.nn.softmax(weights, axis=1)                    # Softmax(dim=1)
    c_t = jnp.einsum("bs,bsh->bh", weights, context)             # bmm(weights, context)
    cat = jnp.concatenate([c_t, h, x], axis=1)
    out = jnp.tanh(cat @ W_out.T + b_out)                        # Linear + Tanh
    return out, weights


if __name__ == "__main__":
    key = jax.random.PRNGKey(0)
    B, S, H, E = 4, 8, 32, 16        # batch, seq, hidden_size, emb_size
    ks = jax.random.split(key, 7)

    h = jax.random.normal(ks[0], (B, H), dtype=jnp.float32)
    x = jax.random.normal(ks[1], (B, E), dtype=jnp.float32)
    # context is fed to init_context as (seq, batch, hidden) and transposed to (B, S, H).
    context_raw = jax.random.normal(ks[2], (S, B, H), dtype=jnp.float32)
    context = jnp.transpose(context_raw, (1, 0, 2))

    W_in = jax.random.normal(ks[3], (H, H), dtype=jnp.float32) / jnp.sqrt(H)
    b_in = jax.random.normal(ks[4], (H,), dtype=jnp.float32) * 0.1
    W_out = jax.random.normal(ks[5], (H, 2 * H + E), dtype=jnp.float32) / jnp.sqrt(2.0 * H + E)
    b_out = jax.random.normal(ks[6], (H,), dtype=jnp.float32) * 0.1

    out, weights = luong_attention_forward(h, x, context, W_in, b_in, W_out, b_out)
    jax.block_until_ready((out, weights))

    # Reference uses the same bf16-rounded context stream; all compute is f32 in both.
    ctx_bf16 = context.astype(jnp.bfloat16).astype(jnp.float32)
    out_ref, w_ref = _reference(h, x, ctx_bf16, W_in, b_in, W_out, b_out)

    assert out.shape == (B, H) and weights.shape == (B, S)
    assert bool(jnp.all(jnp.isfinite(out))) and bool(jnp.all(jnp.isfinite(weights)))
    assert jnp.allclose(weights, w_ref, atol=2e-3, rtol=2e-3)
    assert jnp.allclose(out, out_ref, atol=2e-3, rtol=2e-3)
    # exact softmax normalization: attention weights sum to 1 like torch.nn.Softmax
    assert jnp.allclose(jnp.sum(weights, axis=1), jnp.ones((B,)), atol=1e-5)

    print("KERNEL_OK")
</pallas_src>

<mosaic_0001>
module attributes {stable_mosaic.version = 11 : i64} {
  func.func @_luong_attention_kernel(%arg0: i32, %arg1: memref<4x32xf32, #tpu.memory_space<vmem>>, %arg2: memref<4x16xf32, #tpu.memory_space<vmem>>, %arg3: memref<4x8x32xbf16, #tpu.memory_space<vmem>>, %arg4: memref<32x32xf32, #tpu.memory_space<vmem>>, %arg5: memref<1x32xf32, #tpu.memory_space<vmem>>, %arg6: memref<32x32xf32, #tpu.memory_space<vmem>>, %arg7: memref<32x32xf32, #tpu.memory_space<vmem>>, %arg8: memref<16x32xf32, #tpu.memory_space<vmem>>, %arg9: memref<1x32xf32, #tpu.memory_space<vmem>>, %arg10: memref<4x32xf32, #tpu.memory_space<vmem>>, %arg11: memref<4x8xf32, #tpu.memory_space<vmem>>) attributes {dimension_semantics = [#tpu.dimension_semantics<parallel>], iteration_bounds = array<i64: 1>, scalar_prefetch = 0 : i64, scratch_operands = 0 : i64, tpu.core_type = #tpu.core_type<tc>, window_params = [{transform_indices = @transform_0, window_bounds = array<i64: 4, 32>}, {transform_indices = @transform_1, window_bounds = array<i64: 4, 16>}, {transform_indices = @transform_2, window_bounds = array<i64: 4, 8, 32>}, {pipeline_mode = #tpu.pipeline_mode<synchronous>, transform_indices = @transform_3, window_bounds = array<i64: 32, 32>}, {pipeline_mode = #tpu.pipeline_mode<synchronous>, transform_indices = @transform_4, window_bounds = array<i64: 1, 32>}, {pipeline_mode = #tpu.pipeline_mode<synchronous>, transform_indices = @transform_5, window_bounds = array<i64: 32, 32>}, {pipeline_mode = #tpu.pipeline_mode<synchronous>, transform_indices = @transform_6, window_bounds = array<i64: 32, 32>}, {pipeline_mode = #tpu.pipeline_mode<synchronous>, transform_indices = @transform_7, window_bounds = array<i64: 16, 32>}, {pipeline_mode = #tpu.pipeline_mode<synchronous>, transform_indices = @transform_8, window_bounds = array<i64: 1, 32>}, {transform_indices = @transform_9, window_bounds = array<i64: 4, 32>}, {transform_indices = @transform_10, window_bounds = array<i64: 4, 8>}]} {
    %c0 = arith.constant 0 : index
    %c0_0 = arith.constant 0 : index
    %0 = vector.load %arg1[%c0, %c0_0] : memref<4x32xf32, #tpu.memory_space<vmem>>, vector<4x32xf32>
    %c0_1 = arith.constant 0 : index
    %c0_2 = arith.constant 0 : index
    %1 = vector.load %arg2[%c0_1, %c0_2] : memref<4x16xf32, #tpu.memory_space<vmem>>, vector<4x16xf32>
    %c0_3 = arith.constant 0 : index
    %c0_4 = arith.constant 0 : index
    %c0_5 = arith.constant 0 : index
    %2 = vector.load %arg3[%c0_3, %c0_4, %c0_5] : memref<4x8x32xbf16, #tpu.memory_space<vmem>>, vector<4x8x32xbf16>
    %3 = arith.extf %2 : vector<4x8x32xbf16> to vector<4x8x32xf32>
    %c0_6 = arith.constant 0 : index
    %c0_7 = arith.constant 0 : index
    %4 = vector.load %arg4[%c0_6, %c0_7] : memref<32x32xf32, #tpu.memory_space<vmem>>, vector<32x32xf32>
    %cst = arith.constant dense<0.000000e+00> : vector<4x32xf32>
    %5 = tpu.matmul %0, %4, %cst {dimension_numbers = #tpu.dot_dimension_numbers<[1], [0], [0], [1], [0, 0, 1, 1], [], []>} : vector<4x32xf32>, vector<32x32xf32>, vector<4x32xf32> -> vector<4x32xf32>
    %c0_8 = arith.constant 0 : index
    %c0_9 = arith.constant 0 : index
    %6 = vector.load %arg5[%c0_8, %c0_9] : memref<1x32xf32, #tpu.memory_space<vmem>>, vector<1x32xf32>
    %7 = vector.broadcast %6 : vector<1x32xf32> to vector<4x32xf32>
    %8 = arith.addf %5, %7 : vector<4x32xf32>
    %9 = vector.shape_cast %8 : vector<4x32xf32> to vector<4x1x32xf32>
    %10 = vector.broadcast %9 : vector<4x1x32xf32> to vector<4x8x32xf32>
    %11 = arith.mulf %3, %10 : vector<4x8x32xf32>
    %cst_10 = arith.constant dense<0.000000e+00> : vector<4x8xf32>
    %12 = vector.multi_reduction <add>, %11, %cst_10 [2] : vector<4x8x32xf32> to vector<4x8xf32>
    %cst_11 = arith.constant dense<0xFF800000> : vector<4xf32>
    %13 = vector.multi_reduction <maximumf>, %12, %cst_11 [1] : vector<4x8xf32> to vector<4xf32>
    %14 = vector.shape_cast %13 : vector<4xf32> to vector<4x1xf32>
    %15 = vector.broadcast %14 : vector<4x1xf32> to vector<4x8xf32>
    %16 = arith.subf %12, %15 : vector<4x8xf32>
    %17 = math.exp %16 : vector<4x8xf32>
    %cst_12 = arith.constant dense<0.000000e+00> : vector<4xf32>
    %18 = vector.multi_reduction <add>, %17, %cst_12 [1] : vector<4x8xf32> to vector<4xf32>
    %19 = vector.shape_cast %18 : vector<4xf32> to vector<4x1xf32>
    %20 = vector.broadcast %19 : vector<4x1xf32> to vector<4x8xf32>
    %21 = arith.divf %17, %20 : vector<4x8xf32>
    %c0_13 = arith.constant 0 : index
    %c0_14 = arith.constant 0 : index
    %22 = vector.load %arg11[%c0_13, %c0_14] : memref<4x8xf32, #tpu.memory_space<vmem>>, vector<4x8xf32>
    tpu.vector_store %arg11[%c0_13, %c0_14], %21 {strides = array<i32>} : memref<4x8xf32, #tpu.memory_space<vmem>>, vector<4x8xf32>,
    %23 = vector.shape_cast %21 : vector<4x8xf32> to vector<4x8x1xf32>
    %24 = vector.broadcast %23 : vector<4x8x1xf32> to vector<4x8x32xf32>
    %25 = arith.mulf %3, %24 : vector<4x8x32xf32>
    %cst_15 = arith.constant dense<0.000000e+00> : vector<4x32xf32>
    %26 = vector.multi_reduction <add>, %25, %cst_15 [1] : vector<4x8x32xf32> to vector<4x32xf32>
    %c0_16 = arith.constant 0 : index
    %c0_17 = arith.constant 0 : index
    %27 = vector.load %arg6[%c0_16, %c0_17] : memref<32x32xf32, #tpu.memory_space<vmem>>, vector<32x32xf32>
    %cst_18 = arith.constant dense<0.000000e+00> : vector<4x32xf32>
    %28 = tpu.matmul %26, %27, %cst_18 {dimension_numbers = #tpu.dot_dimension_numbers<[1], [0], [0], [1], [0, 0, 1, 1], [], []>} : vector<4x32xf32>, vector<32x32xf32>, vector<4x32xf32> -> vector<4x32xf32>
    %c0_19 = arith.constant 0 : index
    %c0_20 = arith.constant 0 : index
    %29 = vector.load %arg7[%c0_19, %c0_20] : memref<32x32xf32, #tpu.memory_space<vmem>>, vector<32x32xf32>
    %cst_21 = arith.constant dense<0.000000e+00> : vector<4x32xf32>
    %30 = tpu.matmul %0, %29, %cst_21 {dimension_numbers = #tpu.dot_dimension_numbers<[1], [0], [0], [1], [0, 0, 1, 1], [], []>} : vector<4x32xf32>, vector<32x32xf32>, vector<4x32xf32> -> vector<4x32xf32>
    %31 = arith.addf %28, %30 : vector<4x32xf32>
    %c0_22 = arith.constant 0 : index
    %c0_23 = arith.constant 0 : index
    %32 = vector.load %arg8[%c0_22, %c0_23] : memref<16x32xf32, #tpu.memory_space<vmem>>, vector<16x32xf32>
    %cst_24 = arith.constant dense<0.000000e+00> : vector<4x32xf32>
    %33 = tpu.matmul %1, %32, %cst_24 {dimension_numbers = #tpu.dot_dimension_numbers<[1], [0], [0], [1], [0, 0, 1, 1], [], []>} : vector<4x16xf32>, vector<16x32xf32>, vector<4x32xf32> -> vector<4x32xf32>
    %34 = arith.addf %31, %33 : vector<4x32xf32>
    %c0_25 = arith.constant 0 : index
    %c0_26 = arith.constant 0 : index
    %35 = vector.load %arg9[%c0_25, %c0_26] : memref<1x32xf32, #tpu.memory_space<vmem>>, vector<1x32xf32>
    %36 = vector.broadcast %35 : vector<1x32xf32> to vector<4x32xf32>
    %37 = arith.addf %34, %36 : vector<4x32xf32>
    %38 = math.tanh %37 : vector<4x32xf32>
    %c0_27 = arith.constant 0 : index
    %c0_28 = arith.constant 0 : index
    %39 = vector.load %arg10[%c0_27, %c0_28] : memref<4x32xf32, #tpu.memory_space<vmem>>, vector<4x32xf32>
    tpu.vector_store %arg10[%c0_27, %c0_28], %38 {strides = array<i32>} : memref<4x32xf32, #tpu.memory_space<vmem>>, vector<4x32xf32>,
    return
  }
  func.func @transform_0(%arg0: i32) -> (i32, i32) {
    %c0_i32 = arith.constant 0 : i32
    %c0_i32_0 = arith.constant 0 : i32
    return %arg0, %c0_i32 : i32, i32
  }
  func.func @transform_1(%arg0: i32) -> (i32, i32) {
    %c0_i32 = arith.constant 0 : i32
    %c0_i32_0 = arith.constant 0 : i32
    return %arg0, %c0_i32 : i32, i32
  }
  func.func @transform_2(%arg0: i32) -> (i32, i32, i32) {
    %c0_i32 = arith.constant 0 : i32
    %c0_i32_0 = arith.constant 0 : i32
    %c0_i32_1 = arith.constant 0 : i32
    return %arg0, %c0_i32, %c0_i32_0 : i32, i32, i32
  }
  func.func @transform_3(%arg0: i32) -> (i32, i32) {
    %c0_i32 = arith.constant 0 : i32
    %c0_i32_0 = arith.constant 0 : i32
    %c0_i32_1 = arith.constant 0 : i32
    return %c0_i32, %c0_i32_0 : i32, i32
  }
  func.func @transform_4(%arg0: i32) -> (i32, i32) {
    %c0_i32 = arith.constant 0 : i32
    %c0_i32_0 = arith.constant 0 : i32
    %c0_i32_1 = arith.constant 0 : i32
    return %c0_i32, %c0_i32_0 : i32, i32
  }
  func.func @transform_5(%arg0: i32) -> (i32, i32) {
    %c0_i32 = arith.constant 0 : i32
    %c0_i32_0 = arith.constant 0 : i32
    %c0_i32_1 = arith.constant 0 : i32
    return %c0_i32, %c0_i32_0 : i32, i32
  }
  func.func @transform_6(%arg0: i32) -> (i32, i32) {
    %c0_i32 = arith.constant 0 : i32
    %c0_i32_0 = arith.constant 0 : i32
    %c0_i32_1 = arith.constant 0 : i32
    return %c0_i32, %c0_i32_0 : i32, i32
  }
  func.func @transform_7(%arg0: i32) -> (i32, i32) {
    %c0_i32 = arith.constant 0 : i32
    %c0_i32_0 = arith.constant 0 : i32
    %c0_i32_1 = arith.constant 0 : i32
    return %c0_i32, %c0_i32_0 : i32, i32
  }
  func.func @transform_8(%arg0: i32) -> (i32, i32) {
    %c0_i32 = arith.constant 0 : i32
    %c0_i32_0 = arith.constant 0 : i32
    %c0_i32_1 = arith.constant 0 : i32
    return %c0_i32, %c0_i32_0 : i32, i32
  }
  func.func @transform_9(%arg0: i32) -> (i32, i32) {
    %c0_i32 = arith.constant 0 : i32
    %c0_i32_0 = arith.constant 0 : i32
    return %arg0, %c0_i32 : i32, i32
  }
  func.func @transform_10(%arg0: i32) -> (i32, i32) {
    %c0_i32 = arith.constant 0 : i32
    %c0_i32_0 = arith.constant 0 : i32
    return %arg0, %c0_i32 : i32, i32
  }
}

module attributes {stable_mosaic.version = 11 : i64} {
  func.func @_luong_attention_kernel(%arg0: i32, %arg1: memref<4x32xf32, #tpu.memory_space<vmem>>, %arg2: memref<4x16xf32, #tpu.memory_space<vmem>>, %arg3: memref<4x8x32xbf16, #tpu.memory_space<vmem>>, %arg4: memref<32x32xf32, #tpu.memory_space<vmem>>, %arg5: memref<1x32xf32, #tpu.memory_space<vmem>>, %arg6: memref<32x32xf32, #tpu.memory_space<vmem>>, %arg7: memref<32x32xf32, #tpu.memory_space<vmem>>, %arg8: memref<16x32xf32, #tpu.memory_space<vmem>>, %arg9: memref<1x32xf32, #tpu.memory_space<vmem>>, %arg10: memref<4x32xf32, #tpu.memory_space<vmem>>, %arg11: memref<4x8xf32, #tpu.memory_space<vmem>>) attributes {dimension_semantics = [#tpu.dimension_semantics<parallel>], iteration_bounds = array<i64: 1>, scalar_prefetch = 0 : i64, scratch_operands = 0 : i64, tpu.core_type = #tpu.core_type<tc>, window_params = [{transform_indices = @transform_0, window_bounds = array<i64: 4, 32>}, {transform_indices = @transform_1, window_bounds = array<i64: 4, 16>}, {transform_indices = @transform_2, window_bounds = array<i64: 4, 8, 32>}, {pipeline_mode = #tpu.pipeline_mode<synchronous>, transform_indices = @transform_3, window_bounds = array<i64: 32, 32>}, {pipeline_mode = #tpu.pipeline_mode<synchronous>, transform_indices = @transform_4, window_bounds = array<i64: 1, 32>}, {pipeline_mode = #tpu.pipeline_mode<synchronous>, transform_indices = @transform_5, window_bounds = array<i64: 32, 32>}, {pipeline_mode = #tpu.pipeline_mode<synchronous>, transform_indices = @transform_6, window_bounds = array<i64: 32, 32>}, {pipeline_mode = #tpu.pipeline_mode<synchronous>, transform_indices = @transform_7, window_bounds = array<i64: 16, 32>}, {pipeline_mode = #tpu.pipeline_mode<synchronous>, transform_indices = @transform_8, window_bounds = array<i64: 1, 32>}, {transform_indices = @transform_9, window_bounds = array<i64: 4, 32>}, {transform_indices = @transform_10, window_bounds = array<i64: 4, 8>}]} {
    %c0 = arith.constant 0 : index
    %c0_0 = arith.constant 0 : index
    %0 = vector.load %arg1[%c0, %c0_0] : memref<4x32xf32, #tpu.memory_space<vmem>>, vector<4x32xf32>
    %c0_1 = arith.constant 0 : index
    %c0_2 = arith.constant 0 : index
    %1 = vector.load %arg2[%c0_1, %c0_2] : memref<4x16xf32, #tpu.memory_space<vmem>>, vector<4x16xf32>
    %c0_3 = arith.constant 0 : index
    %c0_4 = arith.constant 0 : index
    %c0_5 = arith.constant 0 : index
    %2 = vector.load %arg3[%c0_3, %c0_4, %c0_5] : memref<4x8x32xbf16, #tpu.memory_space<vmem>>, vector<4x8x32xbf16>
    %3 = arith.extf %2 : vector<4x8x32xbf16> to vector<4x8x32xf32>
    %c0_6 = arith.constant 0 : index
    %c0_7 = arith.constant 0 : index
    %4 = vector.load %arg4[%c0_6, %c0_7] : memref<32x32xf32, #tpu.memory_space<vmem>>, vector<32x32xf32>
    %cst = arith.constant dense<0.000000e+00> : vector<4x32xf32>
    %5 = tpu.matmul %0, %4, %cst {dimension_numbers = #tpu.dot_dimension_numbers<[1], [0], [0], [1], [0, 0, 1, 1], [], []>} : vector<4x32xf32>, vector<32x32xf32>, vector<4x32xf32> -> vector<4x32xf32>
    %c0_8 = arith.constant 0 : index
    %c0_9 = arith.constant 0 : index
    %6 = vector.load %arg5[%c0_8, %c0_9] : memref<1x32xf32, #tpu.memory_space<vmem>>, vector<1x32xf32>
    %7 = vector.broadcast %6 : vector<1x32xf32> to vector<4x32xf32>
    %8 = arith.addf %5, %7 : vector<4x32xf32>
    %9 = vector.shape_cast %8 : vector<4x32xf32> to vector<4x1x32xf32>
    %10 = vector.broadcast %9 : vector<4x1x32xf32> to vector<4x8x32xf32>
    %11 = arith.mulf %3, %10 : vector<4x8x32xf32>
    %cst_10 = arith.constant dense<0.000000e+00> : vector<4x8xf32>
    %12 = vector.multi_reduction <add>, %11, %cst_10 [2] : vector<4x8x32xf32> to vector<4x8xf32>
    %cst_11 = arith.constant dense<0xFF800000> : vector<4xf32>
    %13 = vector.multi_reduction <maximumf>, %12, %cst_11 [1] : vector<4x8xf32> to vector<4xf32>
    %14 = vector.shape_cast %13 : vector<4xf32> to vector<4x1xf32>
    %15 = vector.broadcast %14 : vector<4x1xf32> to vector<4x8xf32>
    %16 = arith.subf %12, %15 : vector<4x8xf32>
    %17 = math.exp %16 : vector<4x8xf32>
    %cst_12 = arith.constant dense<0.000000e+00> : vector<4xf32>
    %18 = vector.multi_reduction <add>, %17, %cst_12 [1] : vector<4x8xf32> to vector<4xf32>
    %19 = vector.shape_cast %18 : vector<4xf32> to vector<4x1xf32>
    %20 = vector.broadcast %19 : vector<4x1xf32> to vector<4x8xf32>
    %21 = arith.divf %17, %20 : vector<4x8xf32>
    %c0_13 = arith.constant 0 : index
    %c0_14 = arith.constant 0 : index
    %22 = vector.load %arg11[%c0_13, %c0_14] : memref<4x8xf32, #tpu.memory_space<vmem>>, vector<4x8xf32>
    tpu.vector_store %arg11[%c0_13, %c0_14], %21 {strides = array<i32>} : memref<4x8xf32, #tpu.memory_space<vmem>>, vector<4x8xf32>,
    %23 = vector.shape_cast %21 : vector<4x8xf32> to vector<4x8x1xf32>
    %24 = vector.broadcast %23 : vector<4x8x1xf32> to vector<4x8x32xf32>
    %25 = arith.mulf %3, %24 : vector<4x8x32xf32>
    %cst_15 = arith.constant dense<0.000000e+00> : vector<4x32xf32>
    %26 = vector.multi_reduction <add>, %25, %cst_15 [1] : vector<4x8x32xf32> to vector<4x32xf32>
    %c0_16 = arith.constant 0 : index
    %c0_17 = arith.constant 0 : index
    %27 = vector.load %arg6[%c0_16, %c0_17] : memref<32x32xf32, #tpu.memory_space<vmem>>, vector<32x32xf32>
    %cst_18 = arith.constant dense<0.000000e+00> : vector<4x32xf32>
    %28 = tpu.matmul %26, %27, %cst_18 {dimension_numbers = #tpu.dot_dimension_numbers<[1], [0], [0], [1], [0, 0, 1, 1], [], []>} : vector<4x32xf32>, vector<32x32xf32>, vector<4x32xf32> -> vector<4x32xf32>
    %c0_19 = arith.constant 0 : index
    %c0_20 = arith.constant 0 : index
    %29 = vector.load %arg7[%c0_19, %c0_20] : memref<32x32xf32, #tpu.memory_space<vmem>>, vector<32x32xf32>
    %cst_21 = arith.constant dense<0.000000e+00> : vector<4x32xf32>
    %30 = tpu.matmul %0, %29, %cst_21 {dimension_numbers = #tpu.dot_dimension_numbers<[1], [0], [0], [1], [0, 0, 1, 1], [], []>} : vector<4x32xf32>, vector<32x32xf32>, vector<4x32xf32> -> vector<4x32xf32>
    %31 = arith.addf %28, %30 : vector<4x32xf32>
    %c0_22 = arith.constant 0 : index
    %c0_23 = arith.constant 0 : index
    %32 = vector.load %arg8[%c0_22, %c0_23] : memref<16x32xf32, #tpu.memory_space<vmem>>, vector<16x32xf32>
    %cst_24 = arith.constant dense<0.000000e+00> : vector<4x32xf32>
    %33 = tpu.matmul %1, %32, %cst_24 {dimension_numbers = #tpu.dot_dimension_numbers<[1], [0], [0], [1], [0, 0, 1, 1], [], []>} : vector<4x16xf32>, vector<16x32xf32>, vector<4x32xf32> -> vector<4x32xf32>
    %34 = arith.addf %31, %33 : vector<4x32xf32>
    %c0_25 = arith.constant 0 : index
    %c0_26 = arith.constant 0 : index
    %35 = vector.load %arg9[%c0_25, %c0_26] : memref<1x32xf32, #tpu.memory_space<vmem>>, vector<1x32xf32>
    %36 = vector.broadcast %35 : vector<1x32xf32> to vector<4x32xf32>
    %37 = arith.addf %34, %36 : vector<4x32xf32>
    %38 = math.tanh %37 : vector<4x32xf32>
    %c0_27 = arith.constant 0 : index
    %c0_28 = arith.constant 0 : index
    %39 = vector.load %arg10[%c0_27, %c0_28] : memref<4x32xf32, #tpu.memory_space<vmem>>, vector<4x32xf32>
    tpu.vector_store %arg10[%c0_27, %c0_28], %38 {strides = array<i32>} : memref<4x32xf32, #tpu.memory_space<vmem>>, vector<4x32xf32>,
    return
  }
  func.func @transform_0(%arg0: i32) -> (i32, i32) {
    %c0_i32 = arith.constant 0 : i32
    %c0_i32_0 = arith.constant 0 : i32
    return %arg0, %c0_i32 : i32, i32
  }
  func.func @transform_1(%arg0: i32) -> (i32, i32) {
    %c0_i32 = arith.constant 0 : i32
    %c0_i32_0 = arith.constant 0 : i32
    return %arg0, %c0_i32 : i32, i32
  }
  func.func @transform_2(%arg0: i32) -> (i32, i32, i32) {
    %c0_i32 = arith.constant 0 : i32
    %c0_i32_0 = arith.constant 0 : i32
    %c0_i32_1 = arith.constant 0 : i32
    return %arg0, %c0_i32, %c0_i32_0 : i32, i32, i32
  }
  func.func @transform_3(%arg0: i32) -> (i32, i32) {
    %c0_i32 = arith.constant 0 : i32
    %c0_i32_0 = arith.constant 0 : i32
    %c0_i32_1 = arith.constant 0 : i32
    return %c0_i32, %c0_i32_0 : i32, i32
  }
  func.func @transform_4(%arg0: i32) -> (i32, i32) {
    %c0_i32 = arith.constant 0 : i32
    %c0_i32_0 = arith.constant 0 : i32
    %c0_i32_1 = arith.constant 0 : i32
    return %c0_i32, %c0_i32_0 : i32, i32
  }
  func.func @transform_5(%arg0: i32) -> (i32, i32) {
    %c0_i32 = arith.constant 0 : i32
    %c0_i32_0 = arith.constant 0 : i32
    %c0_i32_1 = arith.constant 0 : i32
    return %c0_i32, %c0_i32_0 : i32, i32
  }
  func.func @transform_6(%arg0: i32) -> (i32, i32) {
    %c0_i32 = arith.constant 0 : i32
    %c0_i32_0 = arith.constant 0 : i32
    %c0_i32_1 = arith.constant 0 : i32
    return %c0_i32, %c0_i32_0 : i32, i32
  }
  func.func @transform_7(%arg0: i32) -> (i32, i32) {
    %c0_i32 = arith.constant 0 : i32
    %c0_i32_0 = arith.constant 0 : i32
    %c0_i32_1 = arith.constant 0 : i32
    return %c0_i32, %c0_i32_0 : i32, i32
  }
  func.func @transform_8(%arg0: i32) -> (i32, i32) {
    %c0_i32 = arith.constant 0 : i32
    %c0_i32_0 = arith.constant 0 : i32
    %c0_i32_1 = arith.constant 0 : i32
    return %c0_i32, %c0_i32_0 : i32, i32
  }
  func.func @transform_9(%arg0: i32) -> (i32, i32) {
    %c0_i32 = arith.constant 0 : i32
    %c0_i32_0 = arith.constant 0 : i32
    return %arg0, %c0_i32 : i32, i32
  }
  func.func @transform_10(%arg0: i32) -> (i32, i32) {
    %c0_i32 = arith.constant 0 : i32
    %c0_i32_0 = arith.constant 0 : i32
    return %arg0, %c0_i32 : i32, i32
  }
}

</mosaic_0001>

<bundles_post_ra>
// kernel: tpu_custom_call.1
= control target key start
LH: loop header
LB: loop body
LE: loop exit
PB: predicated region body
PF: predicated region fallthrough
CT: control target
= control target key end

     0   :  { %16 = vsyncpa [#allocation3], 0  ;;  %s1382_s0 = inlined_call_operand.hbm [shape: f32[4,32], index: 0, kind: input, shape index: {}]   ;;  %s1383_s1 = inlined_call_operand.hbm [shape: f32[4,16], index: 1, kind: input, shape index: {}]   ;;  %s1384_s2 = inlined_call_operand.hbm [shape: bf16[4,8,32], index: 2, kind: input, shape index: {}]   ;;  %s1385_s3 = inlined_call_operand.hbm [shape: f32[32,32], index: 3, kind: input, shape index: {}]   ;;  %s1386_s4 = inlined_call_operand.vmem [shape: f32[1,32], index: 4, kind: input, shape index: {}]   ;;  %s1387_s5 = inlined_call_operand.hbm [shape: f32[32,32], index: 5, kind: input, shape index: {}]   ;;  %s1388_s6 = inlined_call_operand.hbm [shape: f32[32,32], index: 6, kind: input, shape index: {}]   ;;  %s1389_s7 = inlined_call_operand.vmem [shape: f32[16,32], index: 7, kind: input, shape index: {}]   ;;  %s1390_s8 = inlined_call_operand.vmem [shape: f32[1,32], index: 8, kind: input, shape index: {}]   ;;  %s1391_s9 = inlined_call_operand.hbm [shape: f32[4,32], index: 9, kind: output, shape index: {0}]   ;;  %s1392_s10 = inlined_call_operand.hbm [shape: f32[4,8], index: 10, kind: output, shape index: {1}]  }
   0x1   :  { %17 = vsyncpa [#allocation6], 0 }
   0x2   :  { %18 = vsyncpa [#allocation9], 0 }
   0x3   :  { %19 = vsyncpa [#allocation12], 0 }
   0x4   :  { %20 = vsyncpa [#allocation4], 0 }
   0x5   :  { %21 = vsyncpa [#allocation15], 0  ;;  %s1073_s13 = smov [#allocation5]   ;;  %s1074_s15 = smov [#allocation8]  }
   0x6   :  { %s38_s14 = sshll.u32 %s1073_s13, 4  ;;  %s59_s16 = sshll.u32 %s1074_s15, 4  ;;  %s39_s14 = int_to_ptr.vmem [resolvable:$true] %s38_s14  ;;  %s1145_s16 = int_to_ptr.vmem [resolvable:$true] %s59_s16 }
   0x7   :  { %s885_s19 = scalar_lea.hbm %s1383_s1, 64 }
   0x8   :  { %p886_p0 = scmp.ne.s32.totalorder %s1383_s1, %s885_s19  ;;  %p889_p1 = scmp.lt.u32.totalorder %s885_s19, %s1383_s1 }
   0xa   :  { %p891_p2 = pnand %p889_p1, %p886_p0 }
   0xc   :  { %894 = shalt.err (!%p891_p2)
}
   0xd   :  { %s895_s24 = scalar_lea.vmem %s39_s14, 64  ;;  %p900_p4 = scmp.lt.s32.totalorder %s39_s14, %s39_s14 }
   0xe   :  { %p896_p3 = scmp.ne.s32.totalorder %s39_s14, %s895_s24  ;;  %p901_p5 = scmp.lt.s32.totalorder %s895_s24, %s895_s24 }
  0x10   :  { %p902_p6 = por %p901_p5, %p900_p4 }
  0x12   :  { %p903_p7 = pnand %p902_p6, %p896_p3 }
  0x14   :  { %906 = shalt.err (!%p903_p7)
}
  0x15   :  { %41 = dma.hbm_to_vmem [thread:$0]  %s1383_s1, 64, %s39_s14, [#allocation6]  }
  0x16   :  { %s907_s29 = scalar_lea.hbm %s1385_s3, 512 }
  0x17   :  { %p908_p8 = scmp.ne.s32.totalorder %s1385_s3, %s907_s29  ;;  %p911_p9 = scmp.lt.u32.totalorder %s907_s29, %s1385_s3 }
  0x19   :  { %p913_p10 = pnand %p911_p9, %p908_p8 }
  0x1b   :  { %916 = shalt.err (!%p913_p10)
}
  0x1c   :  { %s917_s15 = scalar_lea.vmem %s1145_s16, 512  ;;  %p922_p12 = scmp.lt.s32.totalorder %s1145_s16, %s1145_s16 }
  0x1d   :  { %p918_p11 = scmp.ne.s32.totalorder %s1145_s16, %s917_s15  ;;  %p923_p13 = scmp.lt.s32.totalorder %s917_s15, %s917_s15 }
  0x1f   :  { %p924_p0 = por %p923_p13, %p922_p12 }
  0x21   :  { %p925_p1 = pnand %p924_p0, %p918_p11 }
  0x23   :  { %928 = shalt.err (!%p925_p1)
}
  0x24   :  { %s1075_s1 = smov 128   ;;  %s1076_s14 = smov 8  }
  0x25   :  { %65 = dma.hbm_to_vmem [thread:$0]  %s1385_s3, 512, %s1145_s16, [#allocation9], %s1075_s1, %s1075_s1, %s1076_s14  }
  0x26   :  { %s1077_s19 = smov [#allocation2]   ;;  %s1078_s21 = smov [#allocation7]  }
  0x27   :  { %s28_s20 = sshll.u32 %s1077_s19, 4  ;;  %s47_s22 = sshll.u32 %s1078_s21, 4  ;;  %s29_s20 = int_to_ptr.vmem [resolvable:$true] %s28_s20  ;;  %s1179_s22 = int_to_ptr.vmem [resolvable:$true] %s47_s22 }
  0x28   :  { %s929_s25 = scalar_lea.hbm %s1382_s0, 64 }
  0x29   :  { %p930_p2 = scmp.ne.s32.totalorder %s1382_s0, %s929_s25  ;;  %p933_p3 = scmp.lt.u32.totalorder %s929_s25, %s1382_s0 }
  0x2b   :  { %p935_p4 = pnand %p933_p3, %p930_p2 }
  0x2d   :  { %938 = shalt.err (!%p935_p4)
}
  0x2e   :  { %s939_s3 = scalar_lea.vmem %s29_s20, 64  ;;  %p944_p6 = scmp.lt.s32.totalorder %s29_s20, %s29_s20 }
  0x2f   :  { %p940_p5 = scmp.ne.s32.totalorder %s29_s20, %s939_s3  ;;  %p945_p7 = scmp.lt.s32.totalorder %s939_s3, %s939_s3 }
  0x31   :  { %p946_p8 = por %p945_p7, %p944_p6 }
  0x33   :  { %p947_p9 = pnand %p946_p8, %p940_p5 }
  0x35   :  { %950 = shalt.err (!%p947_p9)
}
  0x36   :  { %31 = dma.hbm_to_vmem [thread:$0]  %s1382_s0, 64, %s29_s20, [#allocation3]  }
  0x37   :  { %s951_s13 = scalar_lea.hbm %s1384_s2, 256 }
  0x38   :  { %p952_p10 = scmp.ne.s32.totalorder %s1384_s2, %s951_s13  ;;  %p955_p11 = scmp.lt.u32.totalorder %s951_s13, %s1384_s2 }
  0x3a   :  { %p957_p12 = pnand %p955_p11, %p952_p10 }
  0x3c   :  { %960 = shalt.err (!%p957_p12)
}
  0x3d   :  { %s961_s21 = scalar_lea.vmem %s1179_s22, 256  ;;  %p966_p0 = scmp.lt.s32.totalorder %s1179_s22, %s1179_s22 }
  0x3e   :  { %p962_p13 = scmp.ne.s32.totalorder %s1179_s22, %s961_s21  ;;  %p967_p1 = scmp.lt.s32.totalorder %s961_s21, %s961_s21 }
  0x40   :  { %p968_p2 = por %p967_p1, %p966_p0 }
  0x42   :  { %p969_p3 = pnand %p968_p2, %p962_p13 }
  0x44   :  { %972 = shalt.err (!%p969_p3)
}
  0x45   :  { %s1079_s0 = smov 64   ;;  %s1080_s20 = smov 4  }
  0x46   :  { %53 = dma.hbm_to_vmem [thread:$0]  %s1384_s2, 256, %s1179_s22, [#allocation6], %s1079_s0, %s1079_s0, %s1080_s20  }
  0x47   :  { %s1081_s25 = smov [#allocation10]   ;;  %s1082_s27 = smov [#allocation11]  }
  0x48   :  { %s73_s26 = sshll.u32 %s1081_s25, 4  ;;  %s85_s28 = sshll.u32 %s1082_s27, 4  ;;  %s74_s26 = int_to_ptr.vmem [resolvable:$true] %s73_s26  ;;  %s1210_s28 = int_to_ptr.vmem [resolvable:$true] %s85_s28 }
  0x49   :  { %s973_s16 = scalar_lea.hbm %s1387_s5, 512 }
  0x4a   :  { %p974_p4 = scmp.ne.s32.totalorder %s1387_s5, %s973_s16  ;;  %p977_p5 = scmp.lt.u32.totalorder %s973_s16, %s1387_s5 }
  0x4c   :  { %p979_p6 = pnand %p977_p5, %p974_p4 }
  0x4e   :  { %982 = shalt.err (!%p979_p6)
}
  0x4f   :  { %s983_s2 = scalar_lea.vmem %s74_s26, 512  ;;  %p988_p8 = scmp.lt.s32.totalorder %s74_s26, %s74_s26 }
  0x50   :  { %p984_p7 = scmp.ne.s32.totalorder %s74_s26, %s983_s2  ;;  %p989_p9 = scmp.lt.s32.totalorder %s983_s2, %s983_s2 }
  0x52   :  { %p990_p10 = por %p989_p9, %p988_p8 }
  0x54   :  { %p991_p11 = pnand %p990_p10, %p984_p7 }
  0x56   :  { %994 = shalt.err (!%p991_p11)
}
  0x57   :  { %79 = dma.hbm_to_vmem [thread:$0]  %s1387_s5, 512, %s74_s26, [#allocation9], %s1075_s1, %s1075_s1, %s1076_s14  }
  0x58   :  { %s995_s19 = scalar_lea.hbm %s1388_s6, 512 }
  0x59   :  { %p996_p12 = scmp.ne.s32.totalorder %s1388_s6, %s995_s19  ;;  %p999_p13 = scmp.lt.u32.totalorder %s995_s19, %s1388_s6 }
  0x5b   :  { %p1001_p0 = pnand %p999_p13, %p996_p12 }
  0x5d   :  { %1004 = shalt.err (!%p1001_p0)
}
  0x5e   :  { %s1005_s24 = scalar_lea.vmem %s1210_s28, 512  ;;  %p1010_p2 = scmp.lt.s32.totalorder %s1210_s28, %s1210_s28 }
  0x5f   :  { %p1006_p1 = scmp.ne.s32.totalorder %s1210_s28, %s1005_s24  ;;  %p1011_p3 = scmp.lt.s32.totalorder %s1005_s24, %s1005_s24 }
  0x61   :  { %p1012_p4 = por %p1011_p3, %p1010_p2 }
  0x63   :  { %p1013_p5 = pnand %p1012_p4, %p1006_p1 }
  0x65   :  { %1016 = shalt.err (!%p1013_p5)
}
  0x66   :  { %91 = dma.hbm_to_vmem [thread:$0]  %s1388_s6, 512, %s1210_s28, [#allocation12], %s1075_s1, %s1075_s1, %s1076_s14  }
  0x67   :  { %1061 = dma.done.wait [#allocation3], 64  }
  0x68   :  { %1062 = vsyncadd [#allocation3], 4294967232 }
  0x69   :  { %1063 = dma.done.wait [#allocation6], 320  }
  0x6a   :  { %1064 = vsyncadd [#allocation6], 4294966976 }
  0x6b   :  { %1065 = dma.done.wait [#allocation9], 1024  }
  0x6c   :  { %1066 = vsyncadd [#allocation9], 4294966272 }
  0x6d   :  { %1067 = dma.done.wait [#allocation12], 512  }
  0x6e   :  { %1068 = vsyncadd [#allocation12], 4294966784  ;;  %v1083_v0 = vmov 0.0|0.0   ;;  %vm1084_vm0 = vmmov 0   ;;  %v1085_v1 = vmov 0.0   ;;  %v124_v2 = vld [vmem:[#allocation8] sm:$0xff]  ;;  %v213_v11 = vlaneseq }
  0x6f   :  { %827 = vmatprep.subr.bf16.mxu0 %v1083_v0  ;;  %795 = vmatprep.mubr.msk.f32.mxu0 %vm1084_vm0, %v1085_v1  ;;  %v125_v3 = vld [vmem:[#allocation8 + $0x8] sm:$0xff]  ;;  %v126_v4 = vld [vmem:[#allocation8 + $0x10] sm:$0xff]  ;;  %v127_v6 = vld [vmem:[#allocation8 + $0x18] sm:$0xff]  ;;  %vm135_vm1 = vcmask 261120   ;;  %v1086_v9 = vmov 1966171168  }
  0x70   :  { %833 = vmatprep.subr.bf16.mxu1 %v1083_v0  ;;  %806 = vmatprep.mubr.msk.f32.mxu1 %vm1084_vm0, %v1085_v1  ;;  %v828_v5 = vpack.c.bf16 %v125_v3, %v124_v2  ;;  %v831_v7 = vpack.c.bf16 %v127_v6, %v126_v4  ;;  %v1254_v8 = vld [vmem:[#allocation2] sm:$0xf]  ;;  %v211_v10 = vunpack.c.l.s4 %v1086_v9  ;;  %v1261_v13 = vshrl.u32 %v213_v11, 7  ;;  %v754_v14 = vld [vmem:[%s1386_s4] ss:$0 sm:$0xff]  ;;  %v1267_v19 = vld [vmem:[#allocation7] sm:$0xff]  }
  0x71   :  { %v1272_v22 = vld [vmem:[#allocation7 + $0x8] sm:$0xff]   ;;  %v762_v25 = vunpack.c.l.bf16 %v1267_v19  ;;  %v763_v29 = vunpack.c.h.bf16 %v1267_v19  ;;  %v275_v44 = vand.u32 127, %v213_v11  ;;  %vm292_vm2 = vcmask 1041409  }
  0x72   :  { %829 = vmatpush3.bf16.msra.mxu0 %v828_v5  ;;  %v212_v12 = vunpack.c.0.s8 %v211_v10  ;;  %v1270_v21 = vsub.s32 0, %v1261_v13  ;;  %v766_v26 = vunpack.c.l.bf16 %v1272_v22  ;;  %v767_v31 = vunpack.c.h.bf16 %v1272_v22 }
  0x73   :  { %830 = vmatprep.subr.bf16.mxu0 %v1083_v0  ;;  %v1295_v46 = vsub.s32 %v275_v44, %v1261_v13  ;;  %vm294_vm3 = vcmask 1042434   ;;  %vm296_vm4 = vcmask 1043459   ;;  %vm299_vm5 = vcmask 60416  }
  0x74   :  { %v215_v15 = vsub.s32 %v212_v12, %v1261_v13  ;;  %v1087_v58 = vmov 0   ;;  %v310_v59 = vsub.s32 1, %v1261_v13  ;;  %v314_v60 = vsub.s32 2, %v1261_v13 }
  0x75   :  { %866 = vset.pattern.permute.xlu0 %v1087_v58  ;;  %865 = vset.pattern.permute.xlu1 %v1087_v58  ;;  %v318_v61 = vsub.s32 3, %v1261_v13  ;;  %vm636_vm6 = vcmask 130048  }
  0x76   :  { %832 = vmatpush3.bf16.msra.mxu0 %v831_v7 }
  0x77   :  { %839 = vmatprep.subr.bf16.mxu0 %v1083_v0 }
  0x79   :  { %796 = vmatmul.mubr.msk.f32.vlgmr.msra.gmra.mrb[0].mxu0 %vm135_vm1, %v1254_v8 }
  0x7a   :  { %817 = vmatprep.mubr.msk.f32.mxu0 %vm1084_vm0, %v1085_v1 }
 0x14c   :  { %v205_v16 = vpop.f32.mrb[0].mxu0 }
 0x14d   :  { %v206_v17 = vadd.f32 %v754_v14, %v205_v16  ;;  %v797_v18 = vpop.f32.mrb[1].mxu0 }
 0x14f   :  { %v216_v20 = vrot.slane %v206_v17, %v215_v15 }
 0x151   :  { %v217_v23 = vcombine.high %v216_v20, %v216_v20  ;;  %v224_v24 = vrot.slane %v216_v20, %v215_v15 }
 0x153   :  { %v237_v27 = vrot.slane %v224_v24, %v1270_v21  ;;  %v232_v28 = vcombine.high %v224_v24, %v224_v24  ;;  %v231_v30 = vrot.slane %v217_v23, %v215_v15 }
 0x155   :  { %v254_v32 = vmul.f32 %v762_v25, %v237_v27  ;;  %v245_v33 = vrot.slane %v232_v28, %v1270_v21  ;;  %v241_v34 = vrot.slane %v231_v30, %v1270_v21  ;;  %v233_v35 = vcombine.high %v231_v30, %v231_v30 }
 0x157   :  { %v258_v36 = vsel %vm135_vm1, %v254_v32, 0.0  ;;  %v256_v37 = vmul.f32 %v766_v26, %v245_v33  ;;  %v255_v38 = vmul.f32 %v763_v29, %v241_v34  ;;  %v249_v39 = vrot.slane %v233_v35, %v1270_v21 }
 0x158   :  { %259 = vadd.xlane.f32.xlu0 %v258_v36 }
 0x159   :  { %v264_v40 = vsel %vm135_vm1, %v256_v37, 0.0  ;;  %v257_v41 = vmul.f32 %v767_v31, %v249_v39  ;;  %v261_v42 = vsel %vm135_vm1, %v255_v38, 0.0 }
 0x15a   :  { %265 = vadd.xlane.f32.xlu1 %v264_v40 }
 0x15b   :  { %v267_v43 = vsel %vm135_vm1, %v257_v41, 0.0 }
 0x15c   :  { %262 = vadd.xlane.f32.xlu0 %v261_v42 }
 0x15e   :  { %268 = vadd.xlane.f32.xlu1 %v267_v43 }
 0x1e5   :  { %v260_v45 = vpop.xlane.xlu0 %259 }
 0x1e6   :  { %v279_v49 = vrot.slane %v260_v45, %v1295_v46 }
 0x1e7   :  { %v266_v47 = vpop.xlane.xlu1 %265 }
 0x1e8   :  { %v287_v51 = vrot.slane %v266_v47, %v1295_v46 }
 0x1e9   :  { %v263_v48 = vpop.xlane.xlu0 %262 }
 0x1ea   :  { %v283_v50 = vrot.slane %v263_v48, %v1295_v46 }
 0x1eb   :  { %v269_v52 = vpop.xlane.xlu1 %268 }
 0x1ec   :  { %v291_v53 = vrot.slane %v269_v52, %v1295_v46  ;;  %v293_v54 = vsel %vm292_vm2, %v283_v50, %v279_v49 }
 0x1ed   :  { %v295_v55 = vsel %vm294_vm3, %v287_v51, %v293_v54  ;;  %v482_v51 = vld [vmem:[#allocation11 + $0x8] sm:$0xff] }
 0x1ee   :  { %v297_v56 = vsel %vm296_vm4, %v291_v53, %v295_v55  ;;  %v477_v53 = vld [vmem:[#allocation10] sm:$0xff]  ;;  %v478_v54 = vld [vmem:[#allocation10 + $0x8] sm:$0xff] }
 0x1ef   :  { %v300_v57 = vsel %vm299_vm5, %v297_v56, -inf  ;;  %v840_v55 = vpack.c.bf16 %v478_v54, %v477_v53  ;;  %v483_v56 = vld [vmem:[#allocation11 + $0x10] sm:$0xff] }
 0x1f0   :  { %301 = vmax.xlane.f32.xlu0 %v300_v57  ;;  %v484_v57 = vld [vmem:[#allocation11 + $0x18] sm:$0xff] }
 0x1f1   :  { %v837_v58 = vpack.c.bf16 %v484_v57, %v483_v56  ;;  %841 = vmatpush3.bf16.msra.mxu0 %v840_v55 }
 0x1f2   :  { %842 = vmatprep.subr.bf16.mxu0 %v1083_v0 }
 0x27d   :  { %v302_v62 = vpop.xlane.xlu0 %301 }
 0x27e   :  { %v307_v63 = vrot.slane %v302_v62, %v1270_v21  ;;  %v311_v2 = vrot.slane %v302_v62, %v310_v59  ;;  %v315_v3 = vrot.slane %v302_v62, %v314_v60  ;;  %v319_v4 = vrot.slane %v302_v62, %v318_v61 }
 0x280   :  { %v324_v5 = vsub.f32 %v260_v45, %v307_v63  ;;  %v325_v6 = vsub.f32 %v263_v48, %v311_v2  ;;  %v326_v7 = vsub.f32 %v266_v47, %v315_v3  ;;  %v327_v11 = vsub.f32 %v269_v52, %v319_v4  ;;  %v635_v63 = vld [vmem:[%s1389_s7 + $0x8] sm:$0xff]  ;;  %v115_v3 = vld [vmem:[#allocation5] sm:$0xf] }
 0x282   :  { %v328_v9 = vmul.f32 1.442695, %v324_v5  ;;  %v330_v10 = vmul.f32 1.442695, %v325_v6  ;;  %v332_v12 = vmul.f32 1.442695, %v326_v7 }
 0x283   :  { %v334_v14 = vmul.f32 1.442695, %v327_v11 }
 0x284   :  { %867 = vpow2.f32 %v328_v9 }
 0x285   :  { %869 = vpow2.f32 %v330_v10 }
 0x286   :  { %871 = vpow2.f32 %v332_v12 }
 0x287   :  { %873 = vpow2.f32 %v334_v14 }
 0x28e   :  { %v868_v15 = vpop.eup %867 }
 0x28f   :  { %v870_v13 = vpop.eup %869  ;;  %341 = vperm.xlu1 %865, %v868_v15  }
 0x290   :  { %344 = vperm.xlu0 %866, %v870_v13   ;;  %v872_v16 = vpop.eup %871 }
 0x291   :  { %v874_v17 = vpop.eup %873 }
 0x293   :  { %347 = vperm.xlu1 %865, %v872_v16  }
 0x297   :  { %350 = vperm.xlu1 %865, %v874_v17  }
 0x30e   :  { %v342_v18 = vpop.permute.xlu1 %341 }
 0x30f   :  { %v345_v20 = vpop.permute.xlu0 %344  ;;  %v355_v27 = vrot.slane %v342_v18, %v1295_v46 }
 0x310   :  { %v359_v24 = vrot.slane %v345_v20, %v1295_v46 }
 0x312   :  { %v348_v23 = vpop.permute.xlu1 %347  ;;  %v368_v32 = vsel %vm292_vm2, %v359_v24, %v355_v27 }
 0x313   :  { %v363_v28 = vrot.slane %v348_v23, %v1295_v46 }
 0x315   :  { %v369_v34 = vsel %vm294_vm3, %v363_v28, %v368_v32 }
 0x316   :  { %v351_v30 = vpop.permute.xlu1 %350 }
 0x317   :  { %v367_v33 = vrot.slane %v351_v30, %v1295_v46 }
 0x319   :  { %v370_v35 = vsel %vm296_vm4, %v367_v33, %v369_v34 }
 0x31a   :  { %v372_v36 = vsel %vm299_vm5, %v370_v35, 0.0 }
 0x31b   :  { %373 = vadd.xlane.f32.xlu1 %v372_v36 }
 0x3a8   :  { %v374_v37 = vpop.xlane.xlu1 %373 }
 0x3a9   :  { %v379_v38 = vrot.slane %v374_v37, %v1270_v21  ;;  %v383_v39 = vrot.slane %v374_v37, %v310_v59  ;;  %v387_v40 = vrot.slane %v374_v37, %v314_v60  ;;  %v391_v41 = vrot.slane %v374_v37, %v318_v61  ;;  %v481_v21 = vld [vmem:[#allocation11] sm:$0xff]  ;;  %v479_v59 = vld [vmem:[#allocation10 + $0x10] sm:$0xff]  ;;  %v480_v60 = vld [vmem:[#allocation10 + $0x18] sm:$0xff] }
 0x3aa   :  { %v834_v52 = vpack.c.bf16 %v482_v51, %v481_v21  ;;  %v634_v61 = vld [vmem:[%s1389_s7] sm:$0xff]  ;;  %v843_v62 = vpack.c.bf16 %v480_v60, %v479_v59  ;;  %s1088_s7 = smov [#allocation14]  }
 0x3ab   :  { %875 = vrcp.f32 %v379_v38  ;;  %v846_v2 = vpack.c.bf16 %v635_v63, %v634_v61  ;;  %s738_s28 = sshll.u32 %s1088_s7, 4  ;;  %s739_s28 = int_to_ptr.vmem [resolvable:$true] %s738_s28 }
 0x3ac   :  { %877 = vrcp.f32 %v383_v39  ;;  %835 = vmatpush3.bf16.msra.mxu1 %v834_v52  ;;  %844 = vmatpush3.bf16.msra.mxu0 %v843_v62  ;;  %s1017_s29 = scalar_lea.vmem %s739_s28, 64  ;;  %p1022_p7 = scmp.lt.s32.totalorder %s739_s28, %s739_s28 }
 0x3ad   :  { %879 = vrcp.f32 %v387_v40  ;;  %836 = vmatprep.subr.bf16.mxu1 %v1083_v0  ;;  %p1018_p6 = scmp.ne.s32.totalorder %s739_s28, %s1017_s29  ;;  %p1023_p8 = scmp.lt.s32.totalorder %s1017_s29, %s1017_s29 }
 0x3ae   :  { %881 = vrcp.f32 %v391_v41 }
 0x3af   :  { %p1024_p9 = por %p1023_p8, %p1022_p7 }
 0x3b0   :  { %838 = vmatpush3.bf16.msra.mxu1 %v837_v58 }
 0x3b1   :  { %845 = vmatprep.subr.bf16.mxu1 %v1083_v0  ;;  %p1025_p10 = pnand %p1024_p9, %p1018_p6 }
 0x3b3   :  { %807 = vmatmul.mubr.msk.f32.vlgmr.msra.gmra.mrb[0].mxu1 %vm135_vm1, %v1254_v8 }
 0x3b4   :  { %847 = vmatpush3.bf16.msra.mxu1 %v846_v2  ;;  %824 = vmatprep.mubr.msk.f32.mxu1 %vm1084_vm0, %v1085_v1 }
 0x3b5   :  { %v876_v42 = vpop.eup %875 }
 0x3b6   :  { %v397_v43 = vmul.f32 %v876_v42, %v868_v15  ;;  %v878_v44 = vpop.eup %877 }
 0x3b7   :  { %v399_v45 = vmul.f32 %v878_v44, %v870_v13  ;;  %v880_v47 = vpop.eup %879  ;;  %825 = vmatmul.mubr.msk.f32.vlgmr.msra.gmra.mrb[2].mxu1 %vm636_vm6, %v115_v3 }
 0x3b8   :  { %409 = vperm.xlu0 %866, %v397_v43   ;;  %v401_v48 = vmul.f32 %v880_v47, %v872_v16  ;;  %v882_v49 = vpop.eup %881 }
 0x3b9   :  { %v403_v50 = vmul.f32 %v882_v49, %v874_v17 }
 0x3bc   :  { %412 = vperm.xlu0 %866, %v399_v45  }
 0x3c0   :  { %415 = vperm.xlu0 %866, %v401_v48  }
 0x3c4   :  { %418 = vperm.xlu0 %866, %v403_v50  }
 0x437   :  { %v410_v4 = vpop.permute.xlu0 %409 }
 0x438   :  { %v445_v0 = vmul.f32 %v762_v25, %v410_v4  ;;  %v423_v13 = vrot.slane %v410_v4, %v1295_v46 }
 0x43a   :  { %v449_v5 = vsel %vm135_vm1, %v445_v0, 0.0 }
 0x43b   :  { %v450_v6 = vrot.slane %v449_v5, 4  ;;  %v413_v7 = vpop.permute.xlu0 %412 }
 0x43c   :  { %v446_v9 = vmul.f32 %v763_v29, %v413_v7  ;;  %v427_v1 = vrot.slane %v413_v7, %v1295_v46 }
 0x43d   :  { %v451_v10 = vadd.f32 %v450_v6, %v449_v5 }
 0x43e   :  { %v456_v8 = vsel %vm135_vm1, %v446_v9, 0.0  ;;  %v436_v20 = vsel %vm292_vm2, %v427_v1, %v423_v13 }
 0x43f   :  { %v457_v11 = vrot.slane %v456_v8, 4  ;;  %v416_v12 = vpop.permute.xlu0 %415  ;;  %v452_v17 = vrot.slane %v451_v10, 2 }
 0x440   :  { %v447_v14 = vmul.f32 %v766_v26, %v416_v12  ;;  %v431_v25 = vrot.slane %v416_v12, %v1295_v46 }
 0x441   :  { %v458_v15 = vadd.f32 %v457_v11, %v456_v8  ;;  %v453_v33 = vadd.f32 %v452_v17, %v451_v10 }
 0x442   :  { %v463_v16 = vsel %vm135_vm1, %v447_v14, 0.0  ;;  %v437_v28 = vsel %vm294_vm3, %v431_v25, %v436_v20 }
 0x443   :  { %v459_v19 = vrot.slane %v458_v15, 2  ;;  %v464_v29 = vrot.slane %v463_v16, 4  ;;  %v419_v18 = vpop.permute.xlu0 %418 }
 0x444   :  { %v435_v23 = vrot.slane %v419_v18, %v1295_v46  ;;  %v448_v24 = vmul.f32 %v767_v31, %v419_v18  ;;  %v454_v46 = vrot.slane %v453_v33, 1 }
 0x445   :  { %v460_v27 = vadd.f32 %v459_v19, %v458_v15  ;;  %v465_v26 = vadd.f32 %v464_v29, %v463_v16 }
 0x446   :  { %v470_v30 = vsel %vm135_vm1, %v448_v24, 0.0  ;;  %v438_v32 = vsel %vm296_vm4, %v435_v23, %v437_v28  ;;  %v455_v42 = vadd.f32 %v454_v46, %v453_v33 }
 0x447   :  { %v466_v34 = vrot.slane %v465_v26, 2  ;;  %v471_v35 = vrot.slane %v470_v30, 4  ;;  %440 = vst.msk [vmem:[#allocation14] sm:$0xf] %vm299_vm5, %v438_v32  ;;  %v461_v36 = vrot.slane %v460_v27, 1 }
 0x449   :  { %v467_v37 = vadd.f32 %v466_v34, %v465_v26  ;;  %v472_v38 = vadd.f32 %v471_v35, %v470_v30  ;;  %v462_v31 = vadd.f32 %v461_v36, %v460_v27 }
 0x44b   :  { %v468_v39 = vrot.slane %v467_v37, 1  ;;  %v473_v22 = vrot.slane %v472_v38, 2  ;;  %v559_v45 = vsel %vm292_vm2, %v462_v31, %v455_v42 }
 0x44d   :  { %v474_v40 = vadd.f32 %v473_v22, %v472_v38  ;;  %v469_v41 = vadd.f32 %v468_v39, %v467_v37 }
 0x44f   :  { %v475_v43 = vrot.slane %v474_v40, 1  ;;  %v560_v47 = vsel %vm294_vm3, %v469_v41, %v559_v45 }
 0x451   :  { %v476_v44 = vadd.f32 %v475_v43, %v474_v40 }
 0x453   :  { %v561_v48 = vsel %vm296_vm4, %v476_v44, %v560_v47 }
 0x454   :  { %818 = vmatmul.mubr.msk.f32.vlgmr.msra.gmra.mrb[2].mxu0 %vm135_vm1, %v561_v48 }
 0x486   :  { %v551_v49 = vpop.f32.mrb[0].mxu1 }
 0x487   :  { %v808_v50 = vpop.f32.mrb[1].mxu1 }
 0x48a   :  { %v706_v21 = vpop.f32.mrb[2].mxu1 }
 0x48b   :  { %v826_v51 = vpop.f32.mrb[3].mxu1 }
 0x48c   :  { %1028 = shalt.err (!%p1025_p10)
}
 0x48d   :  { %s1029_s30 = scalar_lea.hbm %s1392_s10, 64 }
 0x48e   :  { %p1030_p11 = scmp.ne.s32.totalorder %s1392_s10, %s1029_s30  ;;  %p1033_p12 = scmp.lt.u32.totalorder %s1029_s30, %s1392_s10 }
 0x490   :  { %p1035_p13 = pnand %p1033_p12, %p1030_p11 }
 0x492   :  { %1038 = shalt.err (!%p1035_p13)
}
 0x493   :  { %741 = dma.vmem_to_hbm [thread:$0]  %s739_s28, 64, %s1392_s10, [#allocation15]   ;;  %v759_v55 = vld [vmem:[%s1390_s8] ss:$0 sm:$0xff]  ;;  %vm720_vm7 = vcmask 257024  }
 0x494   :  { %s1089_s19 = smov [#allocation13]  }
 0x495   :  { %s728_s21 = sshll.u32 %s1089_s19, 4  ;;  %s729_s21 = int_to_ptr.vmem [resolvable:$true] %s728_s21 }
 0x496   :  { %s1039_s0 = scalar_lea.vmem %s729_s21, 64  ;;  %p1044_p1 = scmp.lt.s32.totalorder %s729_s21, %s729_s21 }
 0x497   :  { %p1040_p0 = scmp.ne.s32.totalorder %s729_s21, %s1039_s0  ;;  %p1045_p2 = scmp.lt.s32.totalorder %s1039_s0, %s1039_s0 }
 0x499   :  { %p1046_p3 = por %p1045_p2, %p1044_p1 }
 0x49b   :  { %p1047_p4 = pnand %p1046_p3, %p1040_p0 }
 0x527   :  { %v630_v52 = vpop.f32.mrb[2].mxu0 }
 0x528   :  { %v631_v53 = vadd.f32 %v630_v52, %v551_v49  ;;  %v819_v54 = vpop.f32.mrb[3].mxu0 }
 0x52a   :  { %v710_v56 = vadd.f32 %v706_v21, %v631_v53 }
 0x52c   :  { %v718_v57 = vadd.f32 %v759_v55, %v710_v56 }
 0x52e   :  { %883 = vtanh.f32 %v718_v57 }
 0x538   :  { %v884_v58 = vpop.eup %883 }
 0x539   :  { %721 = vst.msk [vmem:[#allocation13] sm:$0xf] %vm720_vm7, %v884_v58 }
 0x53a   :  { %1050 = shalt.err (!%p1047_p4)
}
 0x53b   :  { %s1051_s8 = scalar_lea.hbm %s1391_s9, 64 }
 0x53c   :  { %p1052_p5 = scmp.ne.s32.totalorder %s1391_s9, %s1051_s8  ;;  %p1055_p6 = scmp.lt.u32.totalorder %s1051_s8, %s1391_s9 }
 0x53e   :  { %p1057_p7 = pnand %p1055_p6, %p1052_p5 }
 0x540   :  { %1060 = shalt.err (!%p1057_p7)
}
 0x541   :  { %731 = dma.vmem_to_hbm [thread:$0]  %s729_s21, 64, %s1391_s9, [#allocation4]  }
 0x542   :  { %1069 = dma.done.wait [#allocation4], 64  }
 0x543   :  { %1070 = vsyncadd [#allocation4], 4294967232 }
 0x544   :  { %1071 = dma.done.wait [#allocation15], 64  }
 0x545   :  { %1072 = vsyncadd [#allocation15], 4294967232 }
 0x546   :  { %748 = vsyncpa [#allocation3], 1 }
 0x547   :  { %749 = vsyncpa [#allocation6], 1 }
 0x548   :  { %750 = vsyncpa [#allocation9], 1 }
 0x549   :  { %751 = vsyncpa [#allocation12], 1 }
 0x54a   :  { %752 = vsyncpa [#allocation4], 1 }
 0x54b   :  { %753 = vsyncpa [#allocation15], 1 }

// kernel: tpu_custom_call.1
= control target key start
LH: loop header
LB: loop body
LE: loop exit
PB: predicated region body
PF: predicated region fallthrough
CT: control target
= control target key end

     0   :  { %16 = vsyncpa [#allocation3], 0  ;;  %s1382_s0 = inlined_call_operand.hbm [shape: f32[4,32], index: 0, kind: input, shape index: {}]   ;;  %s1383_s1 = inlined_call_operand.hbm [shape: f32[4,16], index: 1, kind: input, shape index: {}]   ;;  %s1384_s2 = inlined_call_operand.hbm [shape: bf16[4,8,32], index: 2, kind: input, shape index: {}]   ;;  %s1385_s3 = inlined_call_operand.hbm [shape: f32[32,32], index: 3, kind: input, shape index: {}]   ;;  %s1386_s4 = inlined_call_operand.vmem [shape: f32[1,32], index: 4, kind: input, shape index: {}]   ;;  %s1387_s5 = inlined_call_operand.hbm [shape: f32[32,32], index: 5, kind: input, shape index: {}]   ;;  %s1388_s6 = inlined_call_operand.hbm [shape: f32[32,32], index: 6, kind: input, shape index: {}]   ;;  %s1389_s7 = inlined_call_operand.vmem [shape: f32[16,32], index: 7, kind: input, shape index: {}]   ;;  %s1390_s8 = inlined_call_operand.vmem [shape: f32[1,32], index: 8, kind: input, shape index: {}]   ;;  %s1391_s9 = inlined_call_operand.hbm [shape: f32[4,32], index: 9, kind: output, shape index: {0}]   ;;  %s1392_s10 = inlined_call_operand.hbm [shape: f32[4,8], index: 10, kind: output, shape index: {1}]  }
   0x1   :  { %17 = vsyncpa [#allocation6], 0 }
   0x2   :  { %18 = vsyncpa [#allocation9], 0 }
   0x3   :  { %19 = vsyncpa [#allocation12], 0 }
   0x4   :  { %20 = vsyncpa [#allocation4], 0 }
   0x5   :  { %21 = vsyncpa [#allocation15], 0  ;;  %s1073_s13 = smov [#allocation5]   ;;  %s1074_s15 = smov [#allocation8]  }
   0x6   :  { %s38_s14 = sshll.u32 %s1073_s13, 4  ;;  %s59_s16 = sshll.u32 %s1074_s15, 4  ;;  %s39_s14 = int_to_ptr.vmem [resolvable:$true] %s38_s14  ;;  %s1145_s16 = int_to_ptr.vmem [resolvable:$true] %s59_s16 }
   0x7   :  { %s885_s19 = scalar_lea.hbm %s1383_s1, 64 }
   0x8   :  { %p886_p0 = scmp.ne.s32.totalorder %s1383_s1, %s885_s19  ;;  %p889_p1 = scmp.lt.u32.totalorder %s885_s19, %s1383_s1 }
   0xa   :  { %p891_p2 = pnand %p889_p1, %p886_p0 }
   0xc   :  { %894 = shalt.err (!%p891_p2)
}
   0xd   :  { %s895_s24 = scalar_lea.vmem %s39_s14, 64  ;;  %p900_p4 = scmp.lt.s32.totalorder %s39_s14, %s39_s14 }
   0xe   :  { %p896_p3 = scmp.ne.s32.totalorder %s39_s14, %s895_s24  ;;  %p901_p5 = scmp.lt.s32.totalorder %s895_s24, %s895_s24 }
  0x10   :  { %p902_p6 = por %p901_p5, %p900_p4 }
  0x12   :  { %p903_p7 = pnand %p902_p6, %p896_p3 }
  0x14   :  { %906 = shalt.err (!%p903_p7)
}
  0x15   :  { %41 = dma.hbm_to_vmem [thread:$0]  %s1383_s1, 64, %s39_s14, [#allocation6]  }
  0x16   :  { %s907_s29 = scalar_lea.hbm %s1385_s3, 512 }
  0x17   :  { %p908_p8 = scmp.ne.s32.totalorder %s1385_s3, %s907_s29  ;;  %p911_p9 = scmp.lt.u32.totalorder %s907_s29, %s1385_s3 }
  0x19   :  { %p913_p10 = pnand %p911_p9, %p908_p8 }
  0x1b   :  { %916 = shalt.err (!%p913_p10)
}
  0x1c   :  { %s917_s15 = scalar_lea.vmem %s1145_s16, 512  ;;  %p922_p12 = scmp.lt.s32.totalorder %s1145_s16, %s1145_s16 }
  0x1d   :  { %p918_p11 = scmp.ne.s32.totalorder %s1145_s16, %s917_s15  ;;  %p923_p13 = scmp.lt.s32.totalorder %s917_s15, %s917_s15 }
  0x1f   :  { %p924_p0 = por %p923_p13, %p922_p12 }
  0x21   :  { %p925_p1 = pnand %p924_p0, %p918_p11 }
  0x23   :  { %928 = shalt.err (!%p925_p1)
}
  0x24   :  { %s1075_s1 = smov 128   ;;  %s1076_s14 = smov 8  }
  0x25   :  { %65 = dma.hbm_to_vmem [thread:$0]  %s1385_s3, 512, %s1145_s16, [#allocation9], %s1075_s1, %s1075_s1, %s1076_s14  }
  0x26   :  { %s1077_s19 = smov [#allocation2]   ;;  %s1078_s21 = smov [#allocation7]  }
  0x27   :  { %s28_s20 = sshll.u32 %s1077_s19, 4  ;;  %s47_s22 = sshll.u32 %s1078_s21, 4  ;;  %s29_s20 = int_to_ptr.vmem [resolvable:$true] %s28_s20  ;;  %s1179_s22 = int_to_ptr.vmem [resolvable:$true] %s47_s22 }
  0x28   :  { %s929_s25 = scalar_lea.hbm %s1382_s0, 64 }
  0x29   :  { %p930_p2 = scmp.ne.s32.totalorder %s1382_s0, %s929_s25  ;;  %p933_p3 = scmp.lt.u32.totalorder %s929_s25, %s1382_s0 }
  0x2b   :  { %p935_p4 = pnand %p933_p3, %p930_p2 }
  0x2d   :  { %938 = shalt.err (!%p935_p4)
}
  0x2e   :  { %s939_s3 = scalar_lea.vmem %s29_s20, 64  ;;  %p944_p6 = scmp.lt.s32.totalorder %s29_s20, %s29_s20 }
  0x2f   :  { %p940_p5 = scmp.ne.s32.totalorder %s29_s20, %s939_s3  ;;  %p945_p7 = scmp.lt.s32.totalorder %s939_s3, %s939_s3 }
  0x31   :  { %p946_p8 = por %p945_p7, %p944_p6 }
  0x33   :  { %p947_p9 = pnand %p946_p8, %p940_p5 }
  0x35   :  { %950 = shalt.err (!%p947_p9)
}
  0x36   :  { %31 = dma.hbm_to_vmem [thread:$0]  %s1382_s0, 64, %s29_s20, [#allocation3]  }
  0x37   :  { %s951_s13 = scalar_lea.hbm %s1384_s2, 256 }
  0x38   :  { %p952_p10 = scmp.ne.s32.totalorder %s1384_s2, %s951_s13  ;;  %p955_p11 = scmp.lt.u32.totalorder %s951_s13, %s1384_s2 }
  0x3a   :  { %p957_p12 = pnand %p955_p11, %p952_p10 }
  0x3c   :  { %960 = shalt.err (!%p957_p12)
}
  0x3d   :  { %s961_s21 = scalar_lea.vmem %s1179_s22, 256  ;;  %p966_p0 = scmp.lt.s32.totalorder %s1179_s22, %s1179_s22 }
  0x3e   :  { %p962_p13 = scmp.ne.s32.totalorder %s1179_s22, %s961_s21  ;;  %p967_p1 = scmp.lt.s32.totalorder %s961_s21, %s961_s21 }
  0x40   :  { %p968_p2 = por %p967_p1, %p966_p0 }
  0x42   :  { %p969_p3 = pnand %p968_p2, %p962_p13 }
  0x44   :  { %972 = shalt.err (!%p969_p3)
}
  0x45   :  { %s1079_s0 = smov 64   ;;  %s1080_s20 = smov 4  }
  0x46   :  { %53 = dma.hbm_to_vmem [thread:$0]  %s1384_s2, 256, %s1179_s22, [#allocation6], %s1079_s0, %s1079_s0, %s1080_s20  }
  0x47   :  { %s1081_s25 = smov [#allocation10]   ;;  %s1082_s27 = smov [#allocation11]  }
  0x48   :  { %s73_s26 = sshll.u32 %s1081_s25, 4  ;;  %s85_s28 = sshll.u32 %s1082_s27, 4  ;;  %s74_s26 = int_to_ptr.vmem [resolvable:$true] %s73_s26  ;;  %s1210_s28 = int_to_ptr.vmem [resolvable:$true] %s85_s28 }
  0x49   :  { %s973_s16 = scalar_lea.hbm %s1387_s5, 512 }
  0x4a   :  { %p974_p4 = scmp.ne.s32.totalorder %s1387_s5, %s973_s16  ;;  %p977_p5 = scmp.lt.u32.totalorder %s973_s16, %s1387_s5 }
  0x4c   :  { %p979_p6 = pnand %p977_p5, %p974_p4 }
  0x4e   :  { %982 = shalt.err (!%p979_p6)
}
  0x4f   :  { %s983_s2 = scalar_lea.vmem %s74_s26, 512  ;;  %p988_p8 = scmp.lt.s32.totalorder %s74_s26, %s74_s26 }
  0x50   :  { %p984_p7 = scmp.ne.s32.totalorder %s74_s26, %s983_s2  ;;  %p989_p9 = scmp.lt.s32.totalorder %s983_s2, %s983_s2 }
  0x52   :  { %p990_p10 = por %p989_p9, %p988_p8 }
  0x54   :  { %p991_p11 = pnand %p990_p10, %p984_p7 }
  0x56   :  { %994 = shalt.err (!%p991_p11)
}
  0x57   :  { %79 = dma.hbm_to_vmem [thread:$0]  %s1387_s5, 512, %s74_s26, [#allocation9], %s1075_s1, %s1075_s1, %s1076_s14  }
  0x58   :  { %s995_s19 = scalar_lea.hbm %s1388_s6, 512 }
  0x59   :  { %p996_p12 = scmp.ne.s32.totalorder %s1388_s6, %s995_s19  ;;  %p999_p13 = scmp.lt.u32.totalorder %s995_s19, %s1388_s6 }
  0x5b   :  { %p1001_p0 = pnand %p999_p13, %p996_p12 }
  0x5d   :  { %1004 = shalt.err (!%p1001_p0)
}
  0x5e   :  { %s1005_s24 = scalar_lea.vmem %s1210_s28, 512  ;;  %p1010_p2 = scmp.lt.s32.totalorder %s1210_s28, %s1210_s28 }
  0x5f   :  { %p1006_p1 = scmp.ne.s32.totalorder %s1210_s28, %s1005_s24  ;;  %p1011_p3 = scmp.lt.s32.totalorder %s1005_s24, %s1005_s24 }
  0x61   :  { %p1012_p4 = por %p1011_p3, %p1010_p2 }
  0x63   :  { %p1013_p5 = pnand %p1012_p4, %p1006_p1 }
  0x65   :  { %1016 = shalt.err (!%p1013_p5)
}
  0x66   :  { %91 = dma.hbm_to_vmem [thread:$0]  %s1388_s6, 512, %s1210_s28, [#allocation12], %s1075_s1, %s1075_s1, %s1076_s14  }
  0x67   :  { %1061 = dma.done.wait [#allocation3], 64  }
  0x68   :  { %1062 = vsyncadd [#allocation3], 4294967232 }
  0x69   :  { %1063 = dma.done.wait [#allocation6], 320  }
  0x6a   :  { %1064 = vsyncadd [#allocation6], 4294966976 }
  0x6b   :  { %1065 = dma.done.wait [#allocation9], 1024  }
  0x6c   :  { %1066 = vsyncadd [#allocation9], 4294966272 }
  0x6d   :  { %1067 = dma.done.wait [#allocation12], 512  }
  0x6e   :  { %1068 = vsyncadd [#allocation12], 4294966784  ;;  %v1083_v0 = vmov 0.0|0.0   ;;  %vm1084_vm0 = vmmov 0   ;;  %v1085_v1 = vmov 0.0   ;;  %v124_v2 = vld [vmem:[#allocation8] sm:$0xff]  ;;  %v213_v11 = vlaneseq }
  0x6f   :  { %827 = vmatprep.subr.bf16.mxu0 %v1083_v0  ;;  %795 = vmatprep.mubr.msk.f32.mxu0 %vm1084_vm0, %v1085_v1  ;;  %v125_v3 = vld [vmem:[#allocation8 + $0x8] sm:$0xff]  ;;  %v126_v4 = vld [vmem:[#allocation8 + $0x10] sm:$0xff]  ;;  %v127_v6 = vld [vmem:[#allocation8 + $0x18] sm:$0xff]  ;;  %vm135_vm1 = vcmask 261120   ;;  %v1086_v9 = vmov 1966171168  }
  0x70   :  { %833 = vmatprep.subr.bf16.mxu1 %v1083_v0  ;;  %806 = vmatprep.mubr.msk.f32.mxu1 %vm1084_vm0, %v1085_v1  ;;  %v828_v5 = vpack.c.bf16 %v125_v3, %v124_v2  ;;  %v831_v7 = vpack.c.bf16 %v127_v6, %v126_v4  ;;  %v1254_v8 = vld [vmem:[#allocation2] sm:$0xf]  ;;  %v211_v10 = vunpack.c.l.s4 %v1086_v9  ;;  %v1261_v13 = vshrl.u32 %v213_v11, 7  ;;  %v754_v14 = vld [vmem:[%s1386_s4] ss:$0 sm:$0xff]  ;;  %v1267_v19 = vld [vmem:[#allocation7] sm:$0xff]  }
  0x71   :  { %v1272_v22 = vld [vmem:[#allocation7 + $0x8] sm:$0xff]   ;;  %v762_v25 = vunpack.c.l.bf16 %v1267_v19  ;;  %v763_v29 = vunpack.c.h.bf16 %v1267_v19  ;;  %v275_v44 = vand.u32 127, %v213_v11  ;;  %vm292_vm2 = vcmask 1041409  }
  0x72   :  { %829 = vmatpush3.bf16.msra.mxu0 %v828_v5  ;;  %v212_v12 = vunpack.c.0.s8 %v211_v10  ;;  %v1270_v21 = vsub.s32 0, %v1261_v13  ;;  %v766_v26 = vunpack.c.l.bf16 %v1272_v22  ;;  %v767_v31 = vunpack.c.h.bf16 %v1272_v22 }
  0x73   :  { %830 = vmatprep.subr.bf16.mxu0 %v1083_v0  ;;  %v1295_v46 = vsub.s32 %v275_v44, %v1261_v13  ;;  %vm294_vm3 = vcmask 1042434   ;;  %vm296_vm4 = vcmask 1043459   ;;  %vm299_vm5 = vcmask 60416  }
  0x74   :  { %v215_v15 = vsub.s32 %v212_v12, %v1261_v13  ;;  %v1087_v58 = vmov 0   ;;  %v310_v59 = vsub.s32 1, %v1261_v13  ;;  %v314_v60 = vsub.s32 2, %v1261_v13 }
  0x75   :  { %866 = vset.pattern.permute.xlu0 %v1087_v58  ;;  %865 = vset.pattern.permute.xlu1 %v1087_v58  ;;  %v318_v61 = vsub.s32 3, %v1261_v13  ;;  %vm636_vm6 = vcmask 130048  }
  0x76   :  { %832 = vmatpush3.bf16.msra.mxu0 %v831_v7 }
  0x77   :  { %839 = vmatprep.subr.bf16.mxu0 %v1083_v0 }
  0x79   :  { %796 = vmatmul.mubr.msk.f32.vlgmr.msra.gmra.mrb[0].mxu0 %vm135_vm1, %v1254_v8 }
  0x7a   :  { %817 = vmatprep.mubr.msk.f32.mxu0 %vm1084_vm0, %v1085_v1 }
 0x14c   :  { %v205_v16 = vpop.f32.mrb[0].mxu0 }
 0x14d   :  { %v206_v17 = vadd.f32 %v754_v14, %v205_v16  ;;  %v797_v18 = vpop.f32.mrb[1].mxu0 }
 0x14f   :  { %v216_v20 = vrot.slane %v206_v17, %v215_v15 }
 0x151   :  { %v217_v23 = vcombine.high %v216_v20, %v216_v20  ;;  %v224_v24 = vrot.slane %v216_v20, %v215_v15 }
 0x153   :  { %v237_v27 = vrot.slane %v224_v24, %v1270_v21  ;;  %v232_v28 = vcombine.high %v224_v24, %v224_v24  ;;  %v231_v30 = vrot.slane %v217_v23, %v215_v15 }
 0x155   :  { %v254_v32 = vmul.f32 %v762_v25, %v237_v27  ;;  %v245_v33 = vrot.slane %v232_v28, %v1270_v21  ;;  %v241_v34 = vrot.slane %v231_v30, %v1270_v21  ;;  %v233_v35 = vcombine.high %v231_v30, %v231_v30 }
 0x157   :  { %v258_v36 = vsel %vm135_vm1, %v254_v32, 0.0  ;;  %v256_v37 = vmul.f32 %v766_v26, %v245_v33  ;;  %v255_v38 = vmul.f32 %v763_v29, %v241_v34  ;;  %v249_v39 = vrot.slane %v233_v35, %v1270_v21 }
 0x158   :  { %259 = vadd.xlane.f32.xlu0 %v258_v36 }
 0x159   :  { %v264_v40 = vsel %vm135_vm1, %v256_v37, 0.0  ;;  %v257_v41 = vmul.f32 %v767_v31, %v249_v39  ;;  %v261_v42 = vsel %vm135_vm1, %v255_v38, 0.0 }
 0x15a   :  { %265 = vadd.xlane.f32.xlu1 %v264_v40 }
 0x15b   :  { %v267_v43 = vsel %vm135_vm1, %v257_v41, 0.0 }
 0x15c   :  { %262 = vadd.xlane.f32.xlu0 %v261_v42 }
 0x15e   :  { %268 = vadd.xlane.f32.xlu1 %v267_v43 }
 0x1e5   :  { %v260_v45 = vpop.xlane.xlu0 %259 }
 0x1e6   :  { %v279_v49 = vrot.slane %v260_v45, %v1295_v46 }
 0x1e7   :  { %v266_v47 = vpop.xlane.xlu1 %265 }
 0x1e8   :  { %v287_v51 = vrot.slane %v266_v47, %v1295_v46 }
 0x1e9   :  { %v263_v48 = vpop.xlane.xlu0 %262 }
 0x1ea   :  { %v283_v50 = vrot.slane %v263_v48, %v1295_v46 }
 0x1eb   :  { %v269_v52 = vpop.xlane.xlu1 %268 }
 0x1ec   :  { %v291_v53 = vrot.slane %v269_v52, %v1295_v46  ;;  %v293_v54 = vsel %vm292_vm2, %v283_v50, %v279_v49 }
 0x1ed   :  { %v295_v55 = vsel %vm294_vm3, %v287_v51, %v293_v54  ;;  %v482_v51 = vld [vmem:[#allocation11 + $0x8] sm:$0xff] }
 0x1ee   :  { %v297_v56 = vsel %vm296_vm4, %v291_v53, %v295_v55  ;;  %v477_v53 = vld [vmem:[#allocation10] sm:$0xff]  ;;  %v478_v54 = vld [vmem:[#allocation10 + $0x8] sm:$0xff] }
 0x1ef   :  { %v300_v57 = vsel %vm299_vm5, %v297_v56, -inf  ;;  %v840_v55 = vpack.c.bf16 %v478_v54, %v477_v53  ;;  %v483_v56 = vld [vmem:[#allocation11 + $0x10] sm:$0xff] }
 0x1f0   :  { %301 = vmax.xlane.f32.xlu0 %v300_v57  ;;  %v484_v57 = vld [vmem:[#allocation11 + $0x18] sm:$0xff] }
 0x1f1   :  { %v837_v58 = vpack.c.bf16 %v484_v57, %v483_v56  ;;  %841 = vmatpush3.bf16.msra.mxu0 %v840_v55 }
 0x1f2   :  { %842 = vmatprep.subr.bf16.mxu0 %v1083_v0 }
 0x27d   :  { %v302_v62 = vpop.xlane.xlu0 %301 }
 0x27e   :  { %v307_v63 = vrot.slane %v302_v62, %v1270_v21  ;;  %v311_v2 = vrot.slane %v302_v62, %v310_v59  ;;  %v315_v3 = vrot.slane %v302_v62, %v314_v60  ;;  %v319_v4 = vrot.slane %v302_v62, %v318_v61 }
 0x280   :  { %v324_v5 = vsub.f32 %v260_v45, %v307_v63  ;;  %v325_v6 = vsub.f32 %v263_v48, %v311_v2  ;;  %v326_v7 = vsub.f32 %v266_v47, %v315_v3  ;;  %v327_v11 = vsub.f32 %v269_v52, %v319_v4  ;;  %v635_v63 = vld [vmem:[%s1389_s7 + $0x8] sm:$0xff]  ;;  %v115_v3 = vld [vmem:[#allocation5] sm:$0xf] }
 0x282   :  { %v328_v9 = vmul.f32 1.442695, %v324_v5  ;;  %v330_v10 = vmul.f32 1.442695, %v325_v6  ;;  %v332_v12 = vmul.f32 1.442695, %v326_v7 }
 0x283   :  { %v334_v14 = vmul.f32 1.442695, %v327_v11 }
 0x284   :  { %867 = vpow2.f32 %v328_v9 }
 0x285   :  { %869 = vpow2.f32 %v330_v10 }
 0x286   :  { %871 = vpow2.f32 %v332_v12 }
 0x287   :  { %873 = vpow2.f32 %v334_v14 }
 0x28e   :  { %v868_v15 = vpop.eup %867 }
 0x28f   :  { %v870_v13 = vpop.eup %869  ;;  %341 = vperm.xlu1 %865, %v868_v15  }
 0x290   :  { %344 = vperm.xlu0 %866, %v870_v13   ;;  %v872_v16 = vpop.eup %871 }
 0x291   :  { %v874_v17 = vpop.eup %873 }
 0x293   :  { %347 = vperm.xlu1 %865, %v872_v16  }
 0x297   :  { %350 = vperm.xlu1 %865, %v874_v17  }
 0x30e   :  { %v342_v18 = vpop.permute.xlu1 %341 }
 0x30f   :  { %v345_v20 = vpop.permute.xlu0 %344  ;;  %v355_v27 = vrot.slane %v342_v18, %v1295_v46 }
 0x310   :  { %v359_v24 = vrot.slane %v345_v20, %v1295_v46 }
 0x312   :  { %v348_v23 = vpop.permute.xlu1 %347  ;;  %v368_v32 = vsel %vm292_vm2, %v359_v24, %v355_v27 }
 0x313   :  { %v363_v28 = vrot.slane %v348_v23, %v1295_v46 }
 0x315   :  { %v369_v34 = vsel %vm294_vm3, %v363_v28, %v368_v32 }
 0x316   :  { %v351_v30 = vpop.permute.xlu1 %350 }
 0x317   :  { %v367_v33 = vrot.slane %v351_v30, %v1295_v46 }
 0x319   :  { %v370_v35 = vsel %vm296_vm4, %v367_v33, %v369_v34 }
 0x31a   :  { %v372_v36 = vsel %vm299_vm5, %v370_v35, 0.0 }
 0x31b   :  { %373 = vadd.xlane.f32.xlu1 %v372_v36 }
 0x3a8   :  { %v374_v37 = vpop.xlane.xlu1 %373 }
 0x3a9   :  { %v379_v38 = vrot.slane %v374_v37, %v1270_v21  ;;  %v383_v39 = vrot.slane %v374_v37, %v310_v59  ;;  %v387_v40 = vrot.slane %v374_v37, %v314_v60  ;;  %v391_v41 = vrot.slane %v374_v37, %v318_v61  ;;  %v481_v21 = vld [vmem:[#allocation11] sm:$0xff]  ;;  %v479_v59 = vld [vmem:[#allocation10 + $0x10] sm:$0xff]  ;;  %v480_v60 = vld [vmem:[#allocation10 + $0x18] sm:$0xff] }
 0x3aa   :  { %v834_v52 = vpack.c.bf16 %v482_v51, %v481_v21  ;;  %v634_v61 = vld [vmem:[%s1389_s7] sm:$0xff]  ;;  %v843_v62 = vpack.c.bf16 %v480_v60, %v479_v59  ;;  %s1088_s7 = smov [#allocation14]  }
 0x3ab   :  { %875 = vrcp.f32 %v379_v38  ;;  %v846_v2 = vpack.c.bf16 %v635_v63, %v634_v61  ;;  %s738_s28 = sshll.u32 %s1088_s7, 4  ;;  %s739_s28 = int_to_ptr.vmem [resolvable:$true] %s738_s28 }
 0x3ac   :  { %877 = vrcp.f32 %v383_v39  ;;  %835 = vmatpush3.bf16.msra.mxu1 %v834_v52  ;;  %844 = vmatpush3.bf16.msra.mxu0 %v843_v62  ;;  %s1017_s29 = scalar_lea.vmem %s739_s28, 64  ;;  %p1022_p7 = scmp.lt.s32.totalorder %s739_s28, %s739_s28 }
 0x3ad   :  { %879 = vrcp.f32 %v387_v40  ;;  %836 = vmatprep.subr.bf16.mxu1 %v1083_v0  ;;  %p1018_p6 = scmp.ne.s32.totalorder %s739_s28, %s1017_s29  ;;  %p1023_p8 = scmp.lt.s32.totalorder %s1017_s29, %s1017_s29 }
 0x3ae   :  { %881 = vrcp.f32 %v391_v41 }
 0x3af   :  { %p1024_p9 = por %p1023_p8, %p1022_p7 }
 0x3b0   :  { %838 = vmatpush3.bf16.msra.mxu1 %v837_v58 }
 0x3b1   :  { %845 = vmatprep.subr.bf16.mxu1 %v1083_v0  ;;  %p1025_p10 = pnand %p1024_p9, %p1018_p6 }
 0x3b3   :  { %807 = vmatmul.mubr.msk.f32.vlgmr.msra.gmra.mrb[0].mxu1 %vm135_vm1, %v1254_v8 }
 0x3b4   :  { %847 = vmatpush3.bf16.msra.mxu1 %v846_v2  ;;  %824 = vmatprep.mubr.msk.f32.mxu1 %vm1084_vm0, %v1085_v1 }
 0x3b5   :  { %v876_v42 = vpop.eup %875 }
 0x3b6   :  { %v397_v43 = vmul.f32 %v876_v42, %v868_v15  ;;  %v878_v44 = vpop.eup %877 }
 0x3b7   :  { %v399_v45 = vmul.f32 %v878_v44, %v870_v13  ;;  %v880_v47 = vpop.eup %879  ;;  %825 = vmatmul.mubr.msk.f32.vlgmr.msra.gmra.mrb[2].mxu1 %vm636_vm6, %v115_v3 }
 0x3b8   :  { %409 = vperm.xlu0 %866, %v397_v43   ;;  %v401_v48 = vmul.f32 %v880_v47, %v872_v16  ;;  %v882_v49 = vpop.eup %881 }
 0x3b9   :  { %v403_v50 = vmul.f32 %v882_v49, %v874_v17 }
 0x3bc   :  { %412 = vperm.xlu0 %866, %v399_v45  }
 0x3c0   :  { %415 = vperm.xlu0 %866, %v401_v48  }
 0x3c4   :  { %418 = vperm.xlu0 %866, %v403_v50  }
 0x437   :  { %v410_v4 = vpop.permute.xlu0 %409 }
 0x438   :  { %v445_v0 = vmul.f32 %v762_v25, %v410_v4  ;;  %v423_v13 = vrot.slane %v410_v4, %v1295_v46 }
 0x43a   :  { %v449_v5 = vsel %vm135_vm1, %v445_v0, 0.0 }
 0x43b   :  { %v450_v6 = vrot.slane %v449_v5, 4  ;;  %v413_v7 = vpop.permute.xlu0 %412 }
 0x43c   :  { %v446_v9 = vmul.f32 %v763_v29, %v413_v7  ;;  %v427_v1 = vrot.slane %v413_v7, %v1295_v46 }
 0x43d   :  { %v451_v10 = vadd.f32 %v450_v6, %v449_v5 }
 0x43e   :  { %v456_v8 = vsel %vm135_vm1, %v446_v9, 0.0  ;;  %v436_v20 = vsel %vm292_vm2, %v427_v1, %v423_v13 }
 0x43f   :  { %v457_v11 = vrot.slane %v456_v8, 4  ;;  %v416_v12 = vpop.permute.xlu0 %415  ;;  %v452_v17 = vrot.slane %v451_v10, 2 }
 0x440   :  { %v447_v14 = vmul.f32 %v766_v26, %v416_v12  ;;  %v431_v25 = vrot.slane %v416_v12, %v1295_v46 }
 0x441   :  { %v458_v15 = vadd.f32 %v457_v11, %v456_v8  ;;  %v453_v33 = vadd.f32 %v452_v17, %v451_v10 }
 0x442   :  { %v463_v16 = vsel %vm135_vm1, %v447_v14, 0.0  ;;  %v437_v28 = vsel %vm294_vm3, %v431_v25, %v436_v20 }
 0x443   :  { %v459_v19 = vrot.slane %v458_v15, 2  ;;  %v464_v29 = vrot.slane %v463_v16, 4  ;;  %v419_v18 = vpop.permute.xlu0 %418 }
 0x444   :  { %v435_v23 = vrot.slane %v419_v18, %v1295_v46  ;;  %v448_v24 = vmul.f32 %v767_v31, %v419_v18  ;;  %v454_v46 = vrot.slane %v453_v33, 1 }
 0x445   :  { %v460_v27 = vadd.f32 %v459_v19, %v458_v15  ;;  %v465_v26 = vadd.f32 %v464_v29, %v463_v16 }
 0x446   :  { %v470_v30 = vsel %vm135_vm1, %v448_v24, 0.0  ;;  %v438_v32 = vsel %vm296_vm4, %v435_v23, %v437_v28  ;;  %v455_v42 = vadd.f32 %v454_v46, %v453_v33 }
 0x447   :  { %v466_v34 = vrot.slane %v465_v26, 2  ;;  %v471_v35 = vrot.slane %v470_v30, 4  ;;  %440 = vst.msk [vmem:[#allocation14] sm:$0xf] %vm299_vm5, %v438_v32  ;;  %v461_v36 = vrot.slane %v460_v27, 1 }
 0x449   :  { %v467_v37 = vadd.f32 %v466_v34, %v465_v26  ;;  %v472_v38 = vadd.f32 %v471_v35, %v470_v30  ;;  %v462_v31 = vadd.f32 %v461_v36, %v460_v27 }
 0x44b   :  { %v468_v39 = vrot.slane %v467_v37, 1  ;;  %v473_v22 = vrot.slane %v472_v38, 2  ;;  %v559_v45 = vsel %vm292_vm2, %v462_v31, %v455_v42 }
 0x44d   :  { %v474_v40 = vadd.f32 %v473_v22, %v472_v38  ;;  %v469_v41 = vadd.f32 %v468_v39, %v467_v37 }
 0x44f   :  { %v475_v43 = vrot.slane %v474_v40, 1  ;;  %v560_v47 = vsel %vm294_vm3, %v469_v41, %v559_v45 }
 0x451   :  { %v476_v44 = vadd.f32 %v475_v43, %v474_v40 }
 0x453   :  { %v561_v48 = vsel %vm296_vm4, %v476_v44, %v560_v47 }
 0x454   :  { %818 = vmatmul.mubr.msk.f32.vlgmr.msra.gmra.mrb[2].mxu0 %vm135_vm1, %v561_v48 }
 0x486   :  { %v551_v49 = vpop.f32.mrb[0].mxu1 }
 0x487   :  { %v808_v50 = vpop.f32.mrb[1].mxu1 }
 0x48a   :  { %v706_v21 = vpop.f32.mrb[2].mxu1 }
 0x48b   :  { %v826_v51 = vpop.f32.mrb[3].mxu1 }
 0x48c   :  { %1028 = shalt.err (!%p1025_p10)
}
 0x48d   :  { %s1029_s30 = scalar_lea.hbm %s1392_s10, 64 }
 0x48e   :  { %p1030_p11 = scmp.ne.s32.totalorder %s1392_s10, %s1029_s30  ;;  %p1033_p12 = scmp.lt.u32.totalorder %s1029_s30, %s1392_s10 }
 0x490   :  { %p1035_p13 = pnand %p1033_p12, %p1030_p11 }
 0x492   :  { %1038 = shalt.err (!%p1035_p13)
}
 0x493   :  { %741 = dma.vmem_to_hbm [thread:$0]  %s739_s28, 64, %s1392_s10, [#allocation15]   ;;  %v759_v55 = vld [vmem:[%s1390_s8] ss:$0 sm:$0xff]  ;;  %vm720_vm7 = vcmask 257024  }
 0x494   :  { %s1089_s19 = smov [#allocation13]  }
 0x495   :  { %s728_s21 = sshll.u32 %s1089_s19, 4  ;;  %s729_s21 = int_to_ptr.vmem [resolvable:$true] %s728_s21 }
 0x496   :  { %s1039_s0 = scalar_lea.vmem %s729_s21, 64  ;;  %p1044_p1 = scmp.lt.s32.totalorder %s729_s21, %s729_s21 }
 0x497   :  { %p1040_p0 = scmp.ne.s32.totalorder %s729_s21, %s1039_s0  ;;  %p1045_p2 = scmp.lt.s32.totalorder %s1039_s0, %s1039_s0 }
 0x499   :  { %p1046_p3 = por %p1045_p2, %p1044_p1 }
 0x49b   :  { %p1047_p4 = pnand %p1046_p3, %p1040_p0 }
 0x527   :  { %v630_v52 = vpop.f32.mrb[2].mxu0 }
 0x528   :  { %v631_v53 = vadd.f32 %v630_v52, %v551_v49  ;;  %v819_v54 = vpop.f32.mrb[3].mxu0 }
 0x52a   :  { %v710_v56 = vadd.f32 %v706_v21, %v631_v53 }
 0x52c   :  { %v718_v57 = vadd.f32 %v759_v55, %v710_v56 }
 0x52e   :  { %883 = vtanh.f32 %v718_v57 }
 0x538   :  { %v884_v58 = vpop.eup %883 }
 0x539   :  { %721 = vst.msk [vmem:[#allocation13] sm:$0xf] %vm720_vm7, %v884_v58 }
 0x53a   :  { %1050 = shalt.err (!%p1047_p4)
}
 0x53b   :  { %s1051_s8 = scalar_lea.hbm %s1391_s9, 64 }
 0x53c   :  { %p1052_p5 = scmp.ne.s32.totalorder %s1391_s9, %s1051_s8  ;;  %p1055_p6 = scmp.lt.u32.totalorder %s1051_s8, %s1391_s9 }
 0x53e   :  { %p1057_p7 = pnand %p1055_p6, %p1052_p5 }
 0x540   :  { %1060 = shalt.err (!%p1057_p7)
}
 0x541   :  { %731 = dma.vmem_to_hbm [thread:$0]  %s729_s21, 64, %s1391_s9, [#allocation4]  }
 0x542   :  { %1069 = dma.done.wait [#allocation4], 64  }
 0x543   :  { %1070 = vsyncadd [#allocation4], 4294967232 }
 0x544   :  { %1071 = dma.done.wait [#allocation15], 64  }
 0x545   :  { %1072 = vsyncadd [#allocation15], 4294967232 }
 0x546   :  { %748 = vsyncpa [#allocation3], 1 }
 0x547   :  { %749 = vsyncpa [#allocation6], 1 }
 0x548   :  { %750 = vsyncpa [#allocation9], 1 }
 0x549   :  { %751 = vsyncpa [#allocation12], 1 }
 0x54a   :  { %752 = vsyncpa [#allocation4], 1 }
 0x54b   :  { %753 = vsyncpa [#allocation15], 1 }

</bundles_post_ra>
